<compile_context>
chip_gen: v5e
topology: v5e:2x2
jax: 0.10.0
libtpu: 0.0.40
codegen_flags: <defaults>
</compile_context>

<pallas_src>
import numpy as np
import jax
import jax.numpy as jnp
from jax.experimental import pallas as pl
from jax.experimental.pallas import tpu as pltpu

# ---- model hyperparameters (small, consistent with the PyTorch module) ----
NUM_CLASSES = 10
IN_CH = 3
OUT_CH = 8                     # conv1 out channels; conv2 has 2*OUT_CH
IMG = 16                       # image_width == image_height
BATCH = 2
HIDDEN = 256                   # fc1 output size (nn.Linear(..., 256))
FLAT = 2 * OUT_CH * (IMG // 4) * (IMG // 4)   # fc1 input features (== 256)

# ---- derived layout constants ---------------------------------------------
C1 = OUT_CH                    # 8
C2 = 2 * OUT_CH                # 16
CIN_P = 8                      # conv1 input channels zero-padded 3 -> 8
H2 = IMG // 2                  # 8
HQ = IMG // 4                  # 4

W1P = IMG + 2                  # 18  padded row width, stage 1
S1IN = W1P * W1P               # 324 flat padded spatial, stage 1
PAD1 = W1P + 1                 # 19  max |tap shift|, stage 1
X1W = S1IN + 2 * PAD1          # 362 embedded input width, stage 1
L1 = S1IN - PAD1               # 305 pooled-max window length, stage 1

W2P = H2 + 2                   # 10
S2IN = W2P * W2P               # 100
PAD2 = W2P + 1                 # 11
X2W = S2IN + 2 * PAD2          # 122
L2 = S2IN - PAD2               # 89

OUT_PAD = 128                  # fc2 output padded to a full lane group


# ---------------------------------------------------------------------------
# Fused Pallas kernel (one grid step == one image)
# ---------------------------------------------------------------------------
def _cnn_kernel(x1_ref, w1_ref, b1_ref, s1_ref, w2_ref, b2_ref, s2_ref,
                fc1w_ref, fc1b_ref, fc2w_ref, fc2b_ref, out_ref):
    f32 = jnp.float32
    bf16 = jnp.bfloat16

    x1 = x1_ref[0]                                   # (CIN_P, X1W) bf16

    # ---- conv1: 9 accumulated tap matmuls, spatial flat on lanes ----------
    acc1 = jnp.zeros((C1, S1IN), f32)
    for t in range(9):
        d = (t // 3 - 1) * W1P + (t % 3 - 1)
        tap = x1[:, PAD1 + d: PAD1 + d + S1IN]       # (CIN_P, S1IN) bf16
        acc1 = acc1 + jnp.dot(w1_ref[t], tap, preferred_element_type=f32)

    # ---- 2x2 maxpool on pre-activations, then bias + tanh (exact) ---------
    m1 = jnp.maximum(
        jnp.maximum(acc1[:, 0:L1], acc1[:, 1:1 + L1]),
        jnp.maximum(acc1[:, W1P:W1P + L1], acc1[:, W1P + 1:W1P + 1 + L1]))
    t1 = jnp.tanh(m1 + b1_ref[...]).astype(bf16)     # (C1, L1)

    # ---- strided downsample + zero re-pad for conv2 via selection matmul --
    x2 = jnp.dot(t1, s1_ref[...],
                 preferred_element_type=f32).astype(bf16)   # (C1, X2W)

    # ---- conv2: 9 accumulated tap matmuls ---------------------------------
    acc2 = jnp.zeros((C2, S2IN), f32)
    for t in range(9):
        d = (t // 3 - 1) * W2P + (t % 3 - 1)
        tap = x2[:, PAD2 + d: PAD2 + d + S2IN]       # (C1, S2IN)
        acc2 = acc2 + jnp.dot(w2_ref[t], tap, preferred_element_type=f32)

    m2 = jnp.maximum(
        jnp.maximum(acc2[:, 0:L2], acc2[:, 1:1 + L2]),
        jnp.maximum(acc2[:, W2P:W2P + L2], acc2[:, W2P + 1:W2P + 1 + L2]))
    t2 = jnp.tanh(m2 + b2_ref[...]).astype(bf16)     # (C2, L2)

    # ---- pooled features (C2, HQ*HQ) via selection matmul -----------------
    p = jnp.dot(t2, s2_ref[...],
                preferred_element_type=f32).astype(bf16)    # (C2, 16)

    # ---- fc1 as 16 accumulated per-channel matmuls (no flatten relayout) --
    h = fc1b_ref[...]                                # (1, HIDDEN) f32
    for c in range(C2):
        h = h + jnp.dot(p[c:c + 1, :], fc1w_ref[c], preferred_element_type=f32)
    h = jnp.tanh(h).astype(bf16)
    # TODO(synk): nn.Dropout(0.5) is eval-mode identity here (no RNG mask).

    # ---- fc2 (output padded to 128 lanes -> unmasked store) ---------------
    o = jnp.dot(h, fc2w_ref[...], preferred_element_type=f32) + fc2b_ref[...]
    out_ref[0] = o.astype(out_ref.dtype)             # (1, OUT_PAD)


# ---------------------------------------------------------------------------
# One-time parameter preparation (hoisted out of the per-call path)
# ---------------------------------------------------------------------------
def prepare_params(p):
    bf16 = jnp.bfloat16

    # conv taps: w[t, cout, cin] with t = dy*3 + dx; conv1 cin zero-padded ->8
    w1 = jnp.zeros((9, C1, CIN_P), jnp.float32)
    w1 = w1.at[:, :, :IN_CH].set(
        p["conv1_w"].transpose(0, 1, 3, 2).reshape(9, C1, IN_CH))
    w2 = p["conv2_w"].transpose(0, 1, 3, 2).reshape(9, C2, C1)

    # selection matrix pool1 -> conv2 padded-flat input (zero borders built in)
    s1 = np.zeros((L1, X2W), np.float32)
    for py in range(H2):
        for px in range(H2):
            r = (2 * py + 1) * W1P + (2 * px + 1)          # 2x2-max top-left
            q = PAD2 + (py + 1) * W2P + (px + 1)           # conv2 interior pos
            s1[r, q] = 1.0

    # selection matrix pool2 -> (HQ*HQ) feature columns (row-major (py,px))
    s2 = np.zeros((L2, HQ * HQ), np.float32)
    for py in range(HQ):
        for px in range(HQ):
            r = (2 * py + 1) * W2P + (2 * px + 1)
            s2[r, py * HQ + px] = 1.0

    fc2w = jnp.zeros((HIDDEN, OUT_PAD), jnp.float32)
    fc2w = fc2w.at[:, :NUM_CLASSES].set(p["fc2_w"])
    fc2b = jnp.zeros((1, OUT_PAD), jnp.float32)
    fc2b = fc2b.at[0, :NUM_CLASSES].set(p["fc2_b"])

    return {
        "w1": w1.astype(bf16),
        "b1": p["conv1_b"].reshape(C1, 1).astype(jnp.float32),
        "s1": jnp.asarray(s1).astype(bf16),
        "w2": w2.astype(bf16),
        "b2": p["conv2_b"].reshape(C2, 1).astype(jnp.float32),
        "s2": jnp.asarray(s2).astype(bf16),
        # fc1_w rows are in PyTorch NCHW-flatten order c*16 + py*4 + px
        "fc1w": p["fc1_w"].reshape(C2, HQ * HQ, HIDDEN).astype(bf16),
        "fc1b": p["fc1_b"].reshape(1, HIDDEN).astype(jnp.float32),
        "fc2w": fc2w.astype(bf16),
        "fc2b": fc2b,
    }


# ---------------------------------------------------------------------------
# Jitted forward wrapper
# ---------------------------------------------------------------------------
@jax.jit
def cnn_forward(x_nchw, w):
    N = x_nchw.shape[0]
    # channels->8 (zero pad), spatial zero pad to 18x18, flatten, embed at PAD1
    xp = jnp.pad(x_nchw, ((0, 0), (0, CIN_P - IN_CH), (1, 1), (1, 1)))
    x1 = jnp.pad(xp.reshape(N, CIN_P, S1IN), ((0, 0), (0, 0), (PAD1, PAD1)))
    x1 = x1.astype(jnp.bfloat16)                      # (N, CIN_P, X1W)

    out = pl.pallas_call(
        _cnn_kernel,
        out_shape=jax.ShapeDtypeStruct((N, 1, OUT_PAD), jnp.float32),
        grid_spec=pltpu.PrefetchScalarGridSpec(
            num_scalar_prefetch=0,
            grid=(N,),
            in_specs=[
                pl.BlockSpec((1, CIN_P, X1W), lambda n: (n, 0, 0)),
                pl.BlockSpec(w["w1"].shape, lambda n: (0, 0, 0)),
                pl.BlockSpec(w["b1"].shape, lambda n: (0, 0)),
                pl.BlockSpec(w["s1"].shape, lambda n: (0, 0)),
                pl.BlockSpec(w["w2"].shape, lambda n: (0, 0, 0)),
                pl.BlockSpec(w["b2"].shape, lambda n: (0, 0)),
                pl.BlockSpec(w["s2"].shape, lambda n: (0, 0)),
                pl.BlockSpec(w["fc1w"].shape, lambda n: (0, 0, 0)),
                pl.BlockSpec(w["fc1b"].shape, lambda n: (0, 0)),
                pl.BlockSpec(w["fc2w"].shape, lambda n: (0, 0)),
                pl.BlockSpec(w["fc2b"].shape, lambda n: (0, 0)),
            ],
            out_specs=pl.BlockSpec((1, 1, OUT_PAD), lambda n: (n, 0, 0)),
        ),
        compiler_params=pltpu.CompilerParams(
            dimension_semantics=("parallel",)),
    )(x1, w["w1"], w["b1"], w["s1"], w["w2"], w["b2"], w["s2"],
      w["fc1w"], w["fc1b"], w["fc2w"], w["fc2b"])

    return out.reshape(N, OUT_PAD)[:, :NUM_CLASSES]


# ---------------------------------------------------------------------------
# Deterministic parameter init + pure-JAX reference
# ---------------------------------------------------------------------------
def init_params(key):
    ks = jax.random.split(key, 8)
    return {
        "conv1_w": jax.random.normal(ks[0], (3, 3, IN_CH, C1), jnp.float32) * 0.1,
        "conv1_b": jax.random.normal(ks[1], (C1,), jnp.float32) * 0.01,
        "conv2_w": jax.random.normal(ks[2], (3, 3, C1, C2), jnp.float32) * 0.1,
        "conv2_b": jax.random.normal(ks[3], (C2,), jnp.float32) * 0.01,
        "fc1_w": jax.random.normal(ks[4], (FLAT, HIDDEN), jnp.float32) * 0.05,
        "fc1_b": jax.random.normal(ks[5], (HIDDEN,), jnp.float32) * 0.01,
        "fc2_w": jax.random.normal(ks[6], (HIDDEN, NUM_CLASSES), jnp.float32) * 0.05,
        "fc2_b": jax.random.normal(ks[7], (NUM_CLASSES,), jnp.float32) * 0.01,
    }


def reference_forward(x_nchw, p):
    x = jnp.transpose(x_nchw, (0, 2, 3, 1))

    def block(x, w, b):
        y = jax.lax.conv_general_dilated(
            x, w, (1, 1), "SAME",
            dimension_numbers=("NHWC", "HWIO", "NHWC")) + b
        y = jnp.tanh(y)
        return jax.lax.reduce_window(
            y, -jnp.inf, jax.lax.max, (1, 2, 2, 1), (1, 2, 2, 1), "VALID")

    x = block(x, p["conv1_w"], p["conv1_b"])
    x = block(x, p["conv2_w"], p["conv2_b"])
    N = x.shape[0]
    x = jnp.transpose(x, (0, 3, 1, 2)).reshape(N, -1)   # PyTorch NCHW flatten
    h = jnp.tanh(x @ p["fc1_w"] + p["fc1_b"])
    return h @ p["fc2_w"] + p["fc2_b"]


if __name__ == "__main__":
    key = jax.random.PRNGKey(0)
    kx, kp = jax.random.split(key)
    x = jax.random.normal(kx, (BATCH, IN_CH, IMG, IMG), jnp.float32)  # NCHW
    params = init_params(kp)
    prepped = prepare_params(params)          # one-time weight preprocessing

    out = cnn_forward(x, prepped)
    out = jax.block_until_ready(out)
    assert out.shape == (BATCH, NUM_CLASSES), out.shape

    ref = jax.block_until_ready(reference_forward(x, params))
    max_err = float(jnp.max(jnp.abs(out - ref)))
    assert max_err < 5e-2, f"max abs error {max_err}"

    print("KERNEL_OK")
</pallas_src>

<mosaic_0001>
module attributes {stable_mosaic.version = 11 : i64} {
  func.func @_cnn_kernel(%arg0: i32, %arg1: memref<1x8x362xbf16, #tpu.memory_space<vmem>>, %arg2: memref<9x8x8xbf16, #tpu.memory_space<vmem>>, %arg3: memref<8x1xf32, #tpu.memory_space<vmem>>, %arg4: memref<305x122xbf16, #tpu.memory_space<vmem>>, %arg5: memref<9x16x8xbf16, #tpu.memory_space<vmem>>, %arg6: memref<16x1xf32, #tpu.memory_space<vmem>>, %arg7: memref<89x16xbf16, #tpu.memory_space<vmem>>, %arg8: memref<16x16x256xbf16, #tpu.memory_space<vmem>>, %arg9: memref<1x256xf32, #tpu.memory_space<vmem>>, %arg10: memref<256x128xbf16, #tpu.memory_space<vmem>>, %arg11: memref<1x128xf32, #tpu.memory_space<vmem>>, %arg12: memref<1x1x128xf32, #tpu.memory_space<vmem>>) attributes {dimension_semantics = [#tpu.dimension_semantics<parallel>], iteration_bounds = array<i64: 2>, scalar_prefetch = 0 : i64, scratch_operands = 0 : i64, tpu.core_type = #tpu.core_type<tc>, window_params = [{transform_indices = @transform_0, window_bounds = array<i64: 1, 8, 362>}, {pipeline_mode = #tpu.pipeline_mode<synchronous>, transform_indices = @transform_1, window_bounds = array<i64: 9, 8, 8>}, {pipeline_mode = #tpu.pipeline_mode<synchronous>, transform_indices = @transform_2, window_bounds = array<i64: 8, 1>}, {pipeline_mode = #tpu.pipeline_mode<synchronous>, transform_indices = @transform_3, window_bounds = array<i64: 305, 122>}, {pipeline_mode = #tpu.pipeline_mode<synchronous>, transform_indices = @transform_4, window_bounds = array<i64: 9, 16, 8>}, {pipeline_mode = #tpu.pipeline_mode<synchronous>, transform_indices = @transform_5, window_bounds = array<i64: 16, 1>}, {pipeline_mode = #tpu.pipeline_mode<synchronous>, transform_indices = @transform_6, window_bounds = array<i64: 89, 16>}, {pipeline_mode = #tpu.pipeline_mode<synchronous>, transform_indices = @transform_7, window_bounds = array<i64: 16, 16, 256>}, {pipeline_mode = #tpu.pipeline_mode<synchronous>, transform_indices = @transform_8, window_bounds = array<i64: 1, 256>}, {pipeline_mode = #tpu.pipeline_mode<synchronous>, transform_indices = @transform_9, window_bounds = array<i64: 256, 128>}, {pipeline_mode = #tpu.pipeline_mode<synchronous>, transform_indices = @transform_10, window_bounds = array<i64: 1, 128>}, {transform_indices = @transform_11, window_bounds = array<i64: 1, 1, 128>}]} {
    %c0 = arith.constant 0 : index
    %c0_0 = arith.constant 0 : index
    %c0_1 = arith.constant 0 : index
    %0 = vector.load %arg1[%c0, %c0_0, %c0_1] : memref<1x8x362xbf16, #tpu.memory_space<vmem>>, vector<1x8x362xbf16>
    %1 = vector.shape_cast %0 : vector<1x8x362xbf16> to vector<8x362xbf16>
    %cst = arith.constant 0.000000e+00 : f32
    %2 = vector.broadcast %cst : f32 to vector<8x324xf32>
    %3 = vector.extract_strided_slice %1 {offsets = [0, 0], sizes = [8, 324], strides = [1, 1]} : vector<8x362xbf16> to vector<8x324xbf16>
    %c0_2 = arith.constant 0 : index
    %c0_3 = arith.constant 0 : index
    %c0_4 = arith.constant 0 : index
    %4 = vector.load %arg2[%c0_2, %c0_3, %c0_4] : memref<9x8x8xbf16, #tpu.memory_space<vmem>>, vector<1x8x8xbf16>
    %5 = vector.shape_cast %4 : vector<1x8x8xbf16> to vector<8x8xbf16>
    %cst_5 = arith.constant dense<0.000000e+00> : vector<8x324xf32>
    %6 = tpu.matmul %5, %3, %cst_5 {dimension_numbers = #tpu.dot_dimension_numbers<[1], [0], [0], [1], [0, 0, 1, 1], [], []>} : vector<8x8xbf16>, vector<8x324xbf16>, vector<8x324xf32> -> vector<8x324xf32>
    %7 = arith.addf %2, %6 : vector<8x324xf32>
    %8 = vector.extract_strided_slice %1 {offsets = [0, 1], sizes = [8, 324], strides = [1, 1]} : vector<8x362xbf16> to vector<8x324xbf16>
    %c1 = arith.constant 1 : index
    %c0_6 = arith.constant 0 : index
    %c0_7 = arith.constant 0 : index
    %9 = vector.load %arg2[%c1, %c0_6, %c0_7] : memref<9x8x8xbf16, #tpu.memory_space<vmem>>, vector<1x8x8xbf16>
    %10 = vector.shape_cast %9 : vector<1x8x8xbf16> to vector<8x8xbf16>
    %cst_8 = arith.constant dense<0.000000e+00> : vector<8x324xf32>
    %11 = tpu.matmul %10, %8, %cst_8 {dimension_numbers = #tpu.dot_dimension_numbers<[1], [0], [0], [1], [0, 0, 1, 1], [], []>} : vector<8x8xbf16>, vector<8x324xbf16>, vector<8x324xf32> -> vector<8x324xf32>
    %12 = arith.addf %7, %11 : vector<8x324xf32>
    %13 = vector.extract_strided_slice %1 {offsets = [0, 2], sizes = [8, 324], strides = [1, 1]} : vector<8x362xbf16> to vector<8x324xbf16>
    %c2 = arith.constant 2 : index
    %c0_9 = arith.constant 0 : index
    %c0_10 = arith.constant 0 : index
    %14 = vector.load %arg2[%c2, %c0_9, %c0_10] : memref<9x8x8xbf16, #tpu.memory_space<vmem>>, vector<1x8x8xbf16>
    %15 = vector.shape_cast %14 : vector<1x8x8xbf16> to vector<8x8xbf16>
    %cst_11 = arith.constant dense<0.000000e+00> : vector<8x324xf32>
    %16 = tpu.matmul %15, %13, %cst_11 {dimension_numbers = #tpu.dot_dimension_numbers<[1], [0], [0], [1], [0, 0, 1, 1], [], []>} : vector<8x8xbf16>, vector<8x324xbf16>, vector<8x324xf32> -> vector<8x324xf32>
    %17 = arith.addf %12, %16 : vector<8x324xf32>
    %18 = vector.extract_strided_slice %1 {offsets = [0, 18], sizes = [8, 324], strides = [1, 1]} : vector<8x362xbf16> to vector<8x324xbf16>
    %c3 = arith.constant 3 : index
    %c0_12 = arith.constant 0 : index
    %c0_13 = arith.constant 0 : index
    %19 = vector.load %arg2[%c3, %c0_12, %c0_13] : memref<9x8x8xbf16, #tpu.memory_space<vmem>>, vector<1x8x8xbf16>
    %20 = vector.shape_cast %19 : vector<1x8x8xbf16> to vector<8x8xbf16>
    %cst_14 = arith.constant dense<0.000000e+00> : vector<8x324xf32>
    %21 = tpu.matmul %20, %18, %cst_14 {dimension_numbers = #tpu.dot_dimension_numbers<[1], [0], [0], [1], [0, 0, 1, 1], [], []>} : vector<8x8xbf16>, vector<8x324xbf16>, vector<8x324xf32> -> vector<8x324xf32>
    %22 = arith.addf %17, %21 : vector<8x324xf32>
    %23 = vector.extract_strided_slice %1 {offsets = [0, 19], sizes = [8, 324], strides = [1, 1]} : vector<8x362xbf16> to vector<8x324xbf16>
    %c4 = arith.constant 4 : index
    %c0_15 = arith.constant 0 : index
    %c0_16 = arith.constant 0 : index
    %24 = vector.load %arg2[%c4, %c0_15, %c0_16] : memref<9x8x8xbf16, #tpu.memory_space<vmem>>, vector<1x8x8xbf16>
    %25 = vector.shape_cast %24 : vector<1x8x8xbf16> to vector<8x8xbf16>
    %cst_17 = arith.constant dense<0.000000e+00> : vector<8x324xf32>
    %26 = tpu.matmul %25, %23, %cst_17 {dimension_numbers = #tpu.dot_dimension_numbers<[1], [0], [0], [1], [0, 0, 1, 1], [], []>} : vector<8x8xbf16>, vector<8x324xbf16>, vector<8x324xf32> -> vector<8x324xf32>
    %27 = arith.addf %22, %26 : vector<8x324xf32>
    %28 = vector.extract_strided_slice %1 {offsets = [0, 20], sizes = [8, 324], strides = [1, 1]} : vector<8x362xbf16> to vector<8x324xbf16>
    %c5 = arith.constant 5 : index
    %c0_18 = arith.constant 0 : index
    %c0_19 = arith.constant 0 : index
    %29 = vector.load %arg2[%c5, %c0_18, %c0_19] : memref<9x8x8xbf16, #tpu.memory_space<vmem>>, vector<1x8x8xbf16>
    %30 = vector.shape_cast %29 : vector<1x8x8xbf16> to vector<8x8xbf16>
    %cst_20 = arith.constant dense<0.000000e+00> : vector<8x324xf32>
    %31 = tpu.matmul %30, %28, %cst_20 {dimension_numbers = #tpu.dot_dimension_numbers<[1], [0], [0], [1], [0, 0, 1, 1], [], []>} : vector<8x8xbf16>, vector<8x324xbf16>, vector<8x324xf32> -> vector<8x324xf32>
    %32 = arith.addf %27, %31 : vector<8x324xf32>
    %33 = vector.extract_strided_slice %1 {offsets = [0, 36], sizes = [8, 324], strides = [1, 1]} : vector<8x362xbf16> to vector<8x324xbf16>
    %c6 = arith.constant 6 : index
    %c0_21 = arith.constant 0 : index
    %c0_22 = arith.constant 0 : index
    %34 = vector.load %arg2[%c6, %c0_21, %c0_22] : memref<9x8x8xbf16, #tpu.memory_space<vmem>>, vector<1x8x8xbf16>
    %35 = vector.shape_cast %34 : vector<1x8x8xbf16> to vector<8x8xbf16>
    %cst_23 = arith.constant dense<0.000000e+00> : vector<8x324xf32>
    %36 = tpu.matmul %35, %33, %cst_23 {dimension_numbers = #tpu.dot_dimension_numbers<[1], [0], [0], [1], [0, 0, 1, 1], [], []>} : vector<8x8xbf16>, vector<8x324xbf16>, vector<8x324xf32> -> vector<8x324xf32>
    %37 = arith.addf %32, %36 : vector<8x324xf32>
    %38 = vector.extract_strided_slice %1 {offsets = [0, 37], sizes = [8, 324], strides = [1, 1]} : vector<8x362xbf16> to vector<8x324xbf16>
    %c7 = arith.constant 7 : index
    %c0_24 = arith.constant 0 : index
    %c0_25 = arith.constant 0 : index
    %39 = vector.load %arg2[%c7, %c0_24, %c0_25] : memref<9x8x8xbf16, #tpu.memory_space<vmem>>, vector<1x8x8xbf16>
    %40 = vector.shape_cast %39 : vector<1x8x8xbf16> to vector<8x8xbf16>
    %cst_26 = arith.constant dense<0.000000e+00> : vector<8x324xf32>
    %41 = tpu.matmul %40, %38, %cst_26 {dimension_numbers = #tpu.dot_dimension_numbers<[1], [0], [0], [1], [0, 0, 1, 1], [], []>} : vector<8x8xbf16>, vector<8x324xbf16>, vector<8x324xf32> -> vector<8x324xf32>
    %42 = arith.addf %37, %41 : vector<8x324xf32>
    %43 = vector.extract_strided_slice %1 {offsets = [0, 38], sizes = [8, 324], strides = [1, 1]} : vector<8x362xbf16> to vector<8x324xbf16>
    %c8 = arith.constant 8 : index
    %c0_27 = arith.constant 0 : index
    %c0_28 = arith.constant 0 : index
    %44 = vector.load %arg2[%c8, %c0_27, %c0_28] : memref<9x8x8xbf16, #tpu.memory_space<vmem>>, vector<1x8x8xbf16>
    %45 = vector.shape_cast %44 : vector<1x8x8xbf16> to vector<8x8xbf16>
    %cst_29 = arith.constant dense<0.000000e+00> : vector<8x324xf32>
    %46 = tpu.matmul %45, %43, %cst_29 {dimension_numbers = #tpu.dot_dimension_numbers<[1], [0], [0], [1], [0, 0, 1, 1], [], []>} : vector<8x8xbf16>, vector<8x324xbf16>, vector<8x324xf32> -> vector<8x324xf32>
    %47 = arith.addf %42, %46 : vector<8x324xf32>
    %48 = vector.extract_strided_slice %47 {offsets = [0, 0], sizes = [8, 305], strides = [1, 1]} : vector<8x324xf32> to vector<8x305xf32>
    %49 = vector.extract_strided_slice %47 {offsets = [0, 1], sizes = [8, 305], strides = [1, 1]} : vector<8x324xf32> to vector<8x305xf32>
    %50 = arith.maximumf %48, %49 : vector<8x305xf32>
    %51 = vector.extract_strided_slice %47 {offsets = [0, 18], sizes = [8, 305], strides = [1, 1]} : vector<8x324xf32> to vector<8x305xf32>
    %52 = vector.extract_strided_slice %47 {offsets = [0, 19], sizes = [8, 305], strides = [1, 1]} : vector<8x324xf32> to vector<8x305xf32>
    %53 = arith.maximumf %51, %52 : vector<8x305xf32>
    %54 = arith.maximumf %50, %53 : vector<8x305xf32>
    %c0_30 = arith.constant 0 : index
    %c0_31 = arith.constant 0 : index
    %55 = vector.load %arg3[%c0_30, %c0_31] : memref<8x1xf32, #tpu.memory_space<vmem>>, vector<8x1xf32>
    %56 = vector.broadcast %55 : vector<8x1xf32> to vector<8x305xf32>
    %57 = arith.addf %54, %56 : vector<8x305xf32>
    %58 = math.tanh %57 : vector<8x305xf32>
    %59 = arith.truncf %58 : vector<8x305xf32> to vector<8x305xbf16>
    %c0_32 = arith.constant 0 : index
    %c0_33 = arith.constant 0 : index
    %60 = vector.load %arg4[%c0_32, %c0_33] : memref<305x122xbf16, #tpu.memory_space<vmem>>, vector<305x122xbf16>
    %cst_34 = arith.constant dense<0.000000e+00> : vector<8x122xf32>
    %61 = tpu.matmul %59, %60, %cst_34 {dimension_numbers = #tpu.dot_dimension_numbers<[1], [0], [0], [1], [0, 0, 1, 1], [], []>} : vector<8x305xbf16>, vector<305x122xbf16>, vector<8x122xf32> -> vector<8x122xf32>
    %62 = arith.truncf %61 : vector<8x122xf32> to vector<8x122xbf16>
    %cst_35 = arith.constant 0.000000e+00 : f32
    %63 = vector.broadcast %cst_35 : f32 to vector<16x100xf32>
    %64 = vector.extract_strided_slice %62 {offsets = [0, 0], sizes = [8, 100], strides = [1, 1]} : vector<8x122xbf16> to vector<8x100xbf16>
    %c0_36 = arith.constant 0 : index
    %c0_37 = arith.constant 0 : index
    %c0_38 = arith.constant 0 : index
    %65 = vector.load %arg5[%c0_36, %c0_37, %c0_38] : memref<9x16x8xbf16, #tpu.memory_space<vmem>>, vector<1x16x8xbf16>
    %66 = vector.shape_cast %65 : vector<1x16x8xbf16> to vector<16x8xbf16>
    %cst_39 = arith.constant dense<0.000000e+00> : vector<16x100xf32>
    %67 = tpu.matmul %66, %64, %cst_39 {dimension_numbers = #tpu.dot_dimension_numbers<[1], [0], [0], [1], [0, 0, 1, 1], [], []>} : vector<16x8xbf16>, vector<8x100xbf16>, vector<16x100xf32> -> vector<16x100xf32>
    %68 = arith.addf %63, %67 : vector<16x100xf32>
    %69 = vector.extract_strided_slice %62 {offsets = [0, 1], sizes = [8, 100], strides = [1, 1]} : vector<8x122xbf16> to vector<8x100xbf16>
    %c1_40 = arith.constant 1 : index
    %c0_41 = arith.constant 0 : index
    %c0_42 = arith.constant 0 : index
    %70 = vector.load %arg5[%c1_40, %c0_41, %c0_42] : memref<9x16x8xbf16, #tpu.memory_space<vmem>>, vector<1x16x8xbf16>
    %71 = vector.shape_cast %70 : vector<1x16x8xbf16> to vector<16x8xbf16>
    %cst_43 = arith.constant dense<0.000000e+00> : vector<16x100xf32>
    %72 = tpu.matmul %71, %69, %cst_43 {dimension_numbers = #tpu.dot_dimension_numbers<[1], [0], [0], [1], [0, 0, 1, 1], [], []>} : vector<16x8xbf16>, vector<8x100xbf16>, vector<16x100xf32> -> vector<16x100xf32>
    %73 = arith.addf %68, %72 : vector<16x100xf32>
    %74 = vector.extract_strided_slice %62 {offsets = [0, 2], sizes = [8, 100], strides = [1, 1]} : vector<8x122xbf16> to vector<8x100xbf16>
    %c2_44 = arith.constant 2 : index
    %c0_45 = arith.constant 0 : index
    %c0_46 = arith.constant 0 : index
    %75 = vector.load %arg5[%c2_44, %c0_45, %c0_46] : memref<9x16x8xbf16, #tpu.memory_space<vmem>>, vector<1x16x8xbf16>
    %76 = vector.shape_cast %75 : vector<1x16x8xbf16> to vector<16x8xbf16>
    %cst_47 = arith.constant dense<0.000000e+00> : vector<16x100xf32>
    %77 = tpu.matmul %76, %74, %cst_47 {dimension_numbers = #tpu.dot_dimension_numbers<[1], [0], [0], [1], [0, 0, 1, 1], [], []>} : vector<16x8xbf16>, vector<8x100xbf16>, vector<16x100xf32> -> vector<16x100xf32>
    %78 = arith.addf %73, %77 : vector<16x100xf32>
    %79 = vector.extract_strided_slice %62 {offsets = [0, 10], sizes = [8, 100], strides = [1, 1]} : vector<8x122xbf16> to vector<8x100xbf16>
    %c3_48 = arith.constant 3 : index
    %c0_49 = arith.constant 0 : index
    %c0_50 = arith.constant 0 : index
    %80 = vector.load %arg5[%c3_48, %c0_49, %c0_50] : memref<9x16x8xbf16, #tpu.memory_space<vmem>>, vector<1x16x8xbf16>
    %81 = vector.shape_cast %80 : vector<1x16x8xbf16> to vector<16x8xbf16>
    %cst_51 = arith.constant dense<0.000000e+00> : vector<16x100xf32>
    %82 = tpu.matmul %81, %79, %cst_51 {dimension_numbers = #tpu.dot_dimension_numbers<[1], [0], [0], [1], [0, 0, 1, 1], [], []>} : vector<16x8xbf16>, vector<8x100xbf16>, vector<16x100xf32> -> vector<16x100xf32>
    %83 = arith.addf %78, %82 : vector<16x100xf32>
    %84 = vector.extract_strided_slice %62 {offsets = [0, 11], sizes = [8, 100], strides = [1, 1]} : vector<8x122xbf16> to vector<8x100xbf16>
    %c4_52 = arith.constant 4 : index
    %c0_53 = arith.constant 0 : index
    %c0_54 = arith.constant 0 : index
    %85 = vector.load %arg5[%c4_52, %c0_53, %c0_54] : memref<9x16x8xbf16, #tpu.memory_space<vmem>>, vector<1x16x8xbf16>
    %86 = vector.shape_cast %85 : vector<1x16x8xbf16> to vector<16x8xbf16>
    %cst_55 = arith.constant dense<0.000000e+00> : vector<16x100xf32>
    %87 = tpu.matmul %86, %84, %cst_55 {dimension_numbers = #tpu.dot_dimension_numbers<[1], [0], [0], [1], [0, 0, 1, 1], [], []>} : vector<16x8xbf16>, vector<8x100xbf16>, vector<16x100xf32> -> vector<16x100xf32>
    %88 = arith.addf %83, %87 : vector<16x100xf32>
    %89 = vector.extract_strided_slice %62 {offsets = [0, 12], sizes = [8, 100], strides = [1, 1]} : vector<8x122xbf16> to vector<8x100xbf16>
    %c5_56 = arith.constant 5 : index
    %c0_57 = arith.constant 0 : index
    %c0_58 = arith.constant 0 : index
    %90 = vector.load %arg5[%c5_56, %c0_57, %c0_58] : memref<9x16x8xbf16, #tpu.memory_space<vmem>>, vector<1x16x8xbf16>
    %91 = vector.shape_cast %90 : vector<1x16x8xbf16> to vector<16x8xbf16>
    %cst_59 = arith.constant dense<0.000000e+00> : vector<16x100xf32>
    %92 = tpu.matmul %91, %89, %cst_59 {dimension_numbers = #tpu.dot_dimension_numbers<[1], [0], [0], [1], [0, 0, 1, 1], [], []>} : vector<16x8xbf16>, vector<8x100xbf16>, vector<16x100xf32> -> vector<16x100xf32>
    %93 = arith.addf %88, %92 : vector<16x100xf32>
    %94 = vector.extract_strided_slice %62 {offsets = [0, 20], sizes = [8, 100], strides = [1, 1]} : vector<8x122xbf16> to vector<8x100xbf16>
    %c6_60 = arith.constant 6 : index
    %c0_61 = arith.constant 0 : index
    %c0_62 = arith.constant 0 : index
    %95 = vector.load %arg5[%c6_60, %c0_61, %c0_62] : memref<9x16x8xbf16, #tpu.memory_space<vmem>>, vector<1x16x8xbf16>
    %96 = vector.shape_cast %95 : vector<1x16x8xbf16> to vector<16x8xbf16>
    %cst_63 = arith.constant dense<0.000000e+00> : vector<16x100xf32>
    %97 = tpu.matmul %96, %94, %cst_63 {dimension_numbers = #tpu.dot_dimension_numbers<[1], [0], [0], [1], [0, 0, 1, 1], [], []>} : vector<16x8xbf16>, vector<8x100xbf16>, vector<16x100xf32> -> vector<16x100xf32>
    %98 = arith.addf %93, %97 : vector<16x100xf32>
    %99 = vector.extract_strided_slice %62 {offsets = [0, 21], sizes = [8, 100], strides = [1, 1]} : vector<8x122xbf16> to vector<8x100xbf16>
    %c7_64 = arith.constant 7 : index
    %c0_65 = arith.constant 0 : index
    %c0_66 = arith.constant 0 : index
    %100 = vector.load %arg5[%c7_64, %c0_65, %c0_66] : memref<9x16x8xbf16, #tpu.memory_space<vmem>>, vector<1x16x8xbf16>
    %101 = vector.shape_cast %100 : vector<1x16x8xbf16> to vector<16x8xbf16>
    %cst_67 = arith.constant dense<0.000000e+00> : vector<16x100xf32>
    %102 = tpu.matmul %101, %99, %cst_67 {dimension_numbers = #tpu.dot_dimension_numbers<[1], [0], [0], [1], [0, 0, 1, 1], [], []>} : vector<16x8xbf16>, vector<8x100xbf16>, vector<16x100xf32> -> vector<16x100xf32>
    %103 = arith.addf %98, %102 : vector<16x100xf32>
    %104 = vector.extract_strided_slice %62 {offsets = [0, 22], sizes = [8, 100], strides = [1, 1]} : vector<8x122xbf16> to vector<8x100xbf16>
    %c8_68 = arith.constant 8 : index
    %c0_69 = arith.constant 0 : index
    %c0_70 = arith.constant 0 : index
    %105 = vector.load %arg5[%c8_68, %c0_69, %c0_70] : memref<9x16x8xbf16, #tpu.memory_space<vmem>>, vector<1x16x8xbf16>
    %106 = vector.shape_cast %105 : vector<1x16x8xbf16> to vector<16x8xbf16>
    %cst_71 = arith.constant dense<0.000000e+00> : vector<16x100xf32>
    %107 = tpu.matmul %106, %104, %cst_71 {dimension_numbers = #tpu.dot_dimension_numbers<[1], [0], [0], [1], [0, 0, 1, 1], [], []>} : vector<16x8xbf16>, vector<8x100xbf16>, vector<16x100xf32> -> vector<16x100xf32>
    %108 = arith.addf %103, %107 : vector<16x100xf32>
    %109 = vector.extract_strided_slice %108 {offsets = [0, 0], sizes = [16, 89], strides = [1, 1]} : vector<16x100xf32> to vector<16x89xf32>
    %110 = vector.extract_strided_slice %108 {offsets = [0, 1], sizes = [16, 89], strides = [1, 1]} : vector<16x100xf32> to vector<16x89xf32>
    %111 = arith.maximumf %109, %110 : vector<16x89xf32>
    %112 = vector.extract_strided_slice %108 {offsets = [0, 10], sizes = [16, 89], strides = [1, 1]} : vector<16x100xf32> to vector<16x89xf32>
    %113 = vector.extract_strided_slice %108 {offsets = [0, 11], sizes = [16, 89], strides = [1, 1]} : vector<16x100xf32> to vector<16x89xf32>
    %114 = arith.maximumf %112, %113 : vector<16x89xf32>
    %115 = arith.maximumf %111, %114 : vector<16x89xf32>
    %c0_72 = arith.constant 0 : index
    %c0_73 = arith.constant 0 : index
    %116 = vector.load %arg6[%c0_72, %c0_73] : memref<16x1xf32, #tpu.memory_space<vmem>>, vector<16x1xf32>
    %117 = vector.broadcast %116 : vector<16x1xf32> to vector<16x89xf32>
    %118 = arith.addf %115, %117 : vector<16x89xf32>
    %119 = math.tanh %118 : vector<16x89xf32>
    %120 = arith.truncf %119 : vector<16x89xf32> to vector<16x89xbf16>
    %c0_74 = arith.constant 0 : index
    %c0_75 = arith.constant 0 : index
    %121 = vector.load %arg7[%c0_74, %c0_75] : memref<89x16xbf16, #tpu.memory_space<vmem>>, vector<89x16xbf16>
    %cst_76 = arith.constant dense<0.000000e+00> : vector<16x16xf32>
    %122 = tpu.matmul %120, %121, %cst_76 {dimension_numbers = #tpu.dot_dimension_numbers<[1], [0], [0], [1], [0, 0, 1, 1], [], []>} : vector<16x89xbf16>, vector<89x16xbf16>, vector<16x16xf32> -> vector<16x16xf32>
    %123 = arith.truncf %122 : vector<16x16xf32> to vector<16x16xbf16>
    %c0_77 = arith.constant 0 : index
    %c0_78 = arith.constant 0 : index
    %124 = vector.load %arg9[%c0_77, %c0_78] : memref<1x256xf32, #tpu.memory_space<vmem>>, vector<1x256xf32>
    %125 = vector.extract_strided_slice %123 {offsets = [0, 0], sizes = [1, 16], strides = [1, 1]} : vector<16x16xbf16> to vector<1x16xbf16>
    %c0_79 = arith.constant 0 : index
    %c0_80 = arith.constant 0 : index
    %c0_81 = arith.constant 0 : index
    %126 = vector.load %arg8[%c0_79, %c0_80, %c0_81] : memref<16x16x256xbf16, #tpu.memory_space<vmem>>, vector<1x16x256xbf16>
    %127 = vector.shape_cast %126 : vector<1x16x256xbf16> to vector<16x256xbf16>
    %cst_82 = arith.constant dense<0.000000e+00> : vector<1x256xf32>
    %128 = tpu.matmul %125, %127, %cst_82 {dimension_numbers = #tpu.dot_dimension_numbers<[1], [0], [0], [1], [0, 0, 1, 1], [], []>} : vector<1x16xbf16>, vector<16x256xbf16>, vector<1x256xf32> -> vector<1x256xf32>
    %129 = arith.addf %124, %128 : vector<1x256xf32>
    %130 = vector.extract_strided_slice %123 {offsets = [1, 0], sizes = [1, 16], strides = [1, 1]} : vector<16x16xbf16> to vector<1x16xbf16>
    %c1_83 = arith.constant 1 : index
    %c0_84 = arith.constant 0 : index
    %c0_85 = arith.constant 0 : index
    %131 = vector.load %arg8[%c1_83, %c0_84, %c0_85] : memref<16x16x256xbf16, #tpu.memory_space<vmem>>, vector<1x16x256xbf16>
    %132 = vector.shape_cast %131 : vector<1x16x256xbf16> to vector<16x256xbf16>
    %cst_86 = arith.constant dense<0.000000e+00> : vector<1x256xf32>
    %133 = tpu.matmul %130, %132, %cst_86 {dimension_numbers = #tpu.dot_dimension_numbers<[1], [0], [0], [1], [0, 0, 1, 1], [], []>} : vector<1x16xbf16>, vector<16x256xbf16>, vector<1x256xf32> -> vector<1x256xf32>
    %134 = arith.addf %129, %133 : vector<1x256xf32>
    %135 = vector.extract_strided_slice %123 {offsets = [2, 0], sizes = [1, 16], strides = [1, 1]} : vector<16x16xbf16> to vector<1x16xbf16>
    %c2_87 = arith.constant 2 : index
    %c0_88 = arith.constant 0 : index
    %c0_89 = arith.constant 0 : index
    %136 = vector.load %arg8[%c2_87, %c0_88, %c0_89] : memref<16x16x256xbf16, #tpu.memory_space<vmem>>, vector<1x16x256xbf16>
    %137 = vector.shape_cast %136 : vector<1x16x256xbf16> to vector<16x256xbf16>
    %cst_90 = arith.constant dense<0.000000e+00> : vector<1x256xf32>
    %138 = tpu.matmul %135, %137, %cst_90 {dimension_numbers = #tpu.dot_dimension_numbers<[1], [0], [0], [1], [0, 0, 1, 1], [], []>} : vector<1x16xbf16>, vector<16x256xbf16>, vector<1x256xf32> -> vector<1x256xf32>
    %139 = arith.addf %134, %138 : vector<1x256xf32>
    %140 = vector.extract_strided_slice %123 {offsets = [3, 0], sizes = [1, 16], strides = [1, 1]} : vector<16x16xbf16> to vector<1x16xbf16>
    %c3_91 = arith.constant 3 : index
    %c0_92 = arith.constant 0 : index
    %c0_93 = arith.constant 0 : index
    %141 = vector.load %arg8[%c3_91, %c0_92, %c0_93] : memref<16x16x256xbf16, #tpu.memory_space<vmem>>, vector<1x16x256xbf16>
    %142 = vector.shape_cast %141 : vector<1x16x256xbf16> to vector<16x256xbf16>
    %cst_94 = arith.constant dense<0.000000e+00> : vector<1x256xf32>
    %143 = tpu.matmul %140, %142, %cst_94 {dimension_numbers = #tpu.dot_dimension_numbers<[1], [0], [0], [1], [0, 0, 1, 1], [], []>} : vector<1x16xbf16>, vector<16x256xbf16>, vector<1x256xf32> -> vector<1x256xf32>
    %144 = arith.addf %139, %143 : vector<1x256xf32>
    %145 = vector.extract_strided_slice %123 {offsets = [4, 0], sizes = [1, 16], strides = [1, 1]} : vector<16x16xbf16> to vector<1x16xbf16>
    %c4_95 = arith.constant 4 : index
    %c0_96 = arith.constant 0 : index
    %c0_97 = arith.constant 0 : index
    %146 = vector.load %arg8[%c4_95, %c0_96, %c0_97] : memref<16x16x256xbf16, #tpu.memory_space<vmem>>, vector<1x16x256xbf16>
    %147 = vector.shape_cast %146 : vector<1x16x256xbf16> to vector<16x256xbf16>
    %cst_98 = arith.constant dense<0.000000e+00> : vector<1x256xf32>
    %148 = tpu.matmul %145, %147, %cst_98 {dimension_numbers = #tpu.dot_dimension_numbers<[1], [0], [0], [1], [0, 0, 1, 1], [], []>} : vector<1x16xbf16>, vector<16x256xbf16>, vector<1x256xf32> -> vector<1x256xf32>
    %149 = arith.addf %144, %148 : vector<1x256xf32>
    %150 = vector.extract_strided_slice %123 {offsets = [5, 0], sizes = [1, 16], strides = [1, 1]} : vector<16x16xbf16> to vector<1x16xbf16>
    %c5_99 = arith.constant 5 : index
    %c0_100 = arith.constant 0 : index
    %c0_101 = arith.constant 0 : index
    %151 = vector.load %arg8[%c5_99, %c0_100, %c0_101] : memref<16x16x256xbf16, #tpu.memory_space<vmem>>, vector<1x16x256xbf16>
    %152 = vector.shape_cast %151 : vector<1x16x256xbf16> to vector<16x256xbf16>
    %cst_102 = arith.constant dense<0.000000e+00> : vector<1x256xf32>
    %153 = tpu.matmul %150, %152, %cst_102 {dimension_numbers = #tpu.dot_dimension_numbers<[1], [0], [0], [1], [0, 0, 1, 1], [], []>} : vector<1x16xbf16>, vector<16x256xbf16>, vector<1x256xf32> -> vector<1x256xf32>
    %154 = arith.addf %149, %153 : vector<1x256xf32>
    %155 = vector.extract_strided_slice %123 {offsets = [6, 0], sizes = [1, 16], strides = [1, 1]} : vector<16x16xbf16> to vector<1x16xbf16>
    %c6_103 = arith.constant 6 : index
    %c0_104 = arith.constant 0 : index
    %c0_105 = arith.constant 0 : index
    %156 = vector.load %arg8[%c6_103, %c0_104, %c0_105] : memref<16x16x256xbf16, #tpu.memory_space<vmem>>, vector<1x16x256xbf16>
    %157 = vector.shape_cast %156 : vector<1x16x256xbf16> to vector<16x256xbf16>
    %cst_106 = arith.constant dense<0.000000e+00> : vector<1x256xf32>
    %158 = tpu.matmul %155, %157, %cst_106 {dimension_numbers = #tpu.dot_dimension_numbers<[1], [0], [0], [1], [0, 0, 1, 1], [], []>} : vector<1x16xbf16>, vector<16x256xbf16>, vector<1x256xf32> -> vector<1x256xf32>
    %159 = arith.addf %154, %158 : vector<1x256xf32>
    %160 = vector.extract_strided_slice %123 {offsets = [7, 0], sizes = [1, 16], strides = [1, 1]} : vector<16x16xbf16> to vector<1x16xbf16>
    %c7_107 = arith.constant 7 : index
    %c0_108 = arith.constant 0 : index
    %c0_109 = arith.constant 0 : index
    %161 = vector.load %arg8[%c7_107, %c0_108, %c0_109] : memref<16x16x256xbf16, #tpu.memory_space<vmem>>, vector<1x16x256xbf16>
    %162 = vector.shape_cast %161 : vector<1x16x256xbf16> to vector<16x256xbf16>
    %cst_110 = arith.constant dense<0.000000e+00> : vector<1x256xf32>
    %163 = tpu.matmul %160, %162, %cst_110 {dimension_numbers = #tpu.dot_dimension_numbers<[1], [0], [0], [1], [0, 0, 1, 1], [], []>} : vector<1x16xbf16>, vector<16x256xbf16>, vector<1x256xf32> -> vector<1x256xf32>
    %164 = arith.addf %159, %163 : vector<1x256xf32>
    %165 = vector.extract_strided_slice %123 {offsets = [8, 0], sizes = [1, 16], strides = [1, 1]} : vector<16x16xbf16> to vector<1x16xbf16>
    %c8_111 = arith.constant 8 : index
    %c0_112 = arith.constant 0 : index
    %c0_113 = arith.constant 0 : index
    %166 = vector.load %arg8[%c8_111, %c0_112, %c0_113] : memref<16x16x256xbf16, #tpu.memory_space<vmem>>, vector<1x16x256xbf16>
    %167 = vector.shape_cast %166 : vector<1x16x256xbf16> to vector<16x256xbf16>
    %cst_114 = arith.constant dense<0.000000e+00> : vector<1x256xf32>
    %168 = tpu.matmul %165, %167, %cst_114 {dimension_numbers = #tpu.dot_dimension_numbers<[1], [0], [0], [1], [0, 0, 1, 1], [], []>} : vector<1x16xbf16>, vector<16x256xbf16>, vector<1x256xf32> -> vector<1x256xf32>
    %169 = arith.addf %164, %168 : vector<1x256xf32>
    %170 = vector.extract_strided_slice %123 {offsets = [9, 0], sizes = [1, 16], strides = [1, 1]} : vector<16x16xbf16> to vector<1x16xbf16>
    %c9 = arith.constant 9 : index
    %c0_115 = arith.constant 0 : index
    %c0_116 = arith.constant 0 : index
    %171 = vector.load %arg8[%c9, %c0_115, %c0_116] : memref<16x16x256xbf16, #tpu.memory_space<vmem>>, vector<1x16x256xbf16>
    %172 = vector.shape_cast %171 : vector<1x16x256xbf16> to vector<16x256xbf16>
    %cst_117 = arith.constant dense<0.000000e+00> : vector<1x256xf32>
    %173 = tpu.matmul %170, %172, %cst_117 {dimension_numbers = #tpu.dot_dimension_numbers<[1], [0], [0], [1], [0, 0, 1, 1], [], []>} : vector<1x16xbf16>, vector<16x256xbf16>, vector<1x256xf32> -> vector<1x256xf32>
    %174 = arith.addf %169, %173 : vector<1x256xf32>
    %175 = vector.extract_strided_slice %123 {offsets = [10, 0], sizes = [1, 16], strides = [1, 1]} : vector<16x16xbf16> to vector<1x16xbf16>
    %c10 = arith.constant 10 : index
    %c0_118 = arith.constant 0 : index
    %c0_119 = arith.constant 0 : index
    %176 = vector.load %arg8[%c10, %c0_118, %c0_119] : memref<16x16x256xbf16, #tpu.memory_space<vmem>>, vector<1x16x256xbf16>
    %177 = vector.shape_cast %176 : vector<1x16x256xbf16> to vector<16x256xbf16>
    %cst_120 = arith.constant dense<0.000000e+00> : vector<1x256xf32>
    %178 = tpu.matmul %175, %177, %cst_120 {dimension_numbers = #tpu.dot_dimension_numbers<[1], [0], [0], [1], [0, 0, 1, 1], [], []>} : vector<1x16xbf16>, vector<16x256xbf16>, vector<1x256xf32> -> vector<1x256xf32>
    %179 = arith.addf %174, %178 : vector<1x256xf32>
    %180 = vector.extract_strided_slice %123 {offsets = [11, 0], sizes = [1, 16], strides = [1, 1]} : vector<16x16xbf16> to vector<1x16xbf16>
    %c11 = arith.constant 11 : index
    %c0_121 = arith.constant 0 : index
    %c0_122 = arith.constant 0 : index
    %181 = vector.load %arg8[%c11, %c0_121, %c0_122] : memref<16x16x256xbf16, #tpu.memory_space<vmem>>, vector<1x16x256xbf16>
    %182 = vector.shape_cast %181 : vector<1x16x256xbf16> to vector<16x256xbf16>
    %cst_123 = arith.constant dense<0.000000e+00> : vector<1x256xf32>
    %183 = tpu.matmul %180, %182, %cst_123 {dimension_numbers = #tpu.dot_dimension_numbers<[1], [0], [0], [1], [0, 0, 1, 1], [], []>} : vector<1x16xbf16>, vector<16x256xbf16>, vector<1x256xf32> -> vector<1x256xf32>
    %184 = arith.addf %179, %183 : vector<1x256xf32>
    %185 = vector.extract_strided_slice %123 {offsets = [12, 0], sizes = [1, 16], strides = [1, 1]} : vector<16x16xbf16> to vector<1x16xbf16>
    %c12 = arith.constant 12 : index
    %c0_124 = arith.constant 0 : index
    %c0_125 = arith.constant 0 : index
    %186 = vector.load %arg8[%c12, %c0_124, %c0_125] : memref<16x16x256xbf16, #tpu.memory_space<vmem>>, vector<1x16x256xbf16>
    %187 = vector.shape_cast %186 : vector<1x16x256xbf16> to vector<16x256xbf16>
    %cst_126 = arith.constant dense<0.000000e+00> : vector<1x256xf32>
    %188 = tpu.matmul %185, %187, %cst_126 {dimension_numbers = #tpu.dot_dimension_numbers<[1], [0], [0], [1], [0, 0, 1, 1], [], []>} : vector<1x16xbf16>, vector<16x256xbf16>, vector<1x256xf32> -> vector<1x256xf32>
    %189 = arith.addf %184, %188 : vector<1x256xf32>
    %190 = vector.extract_strided_slice %123 {offsets = [13, 0], sizes = [1, 16], strides = [1, 1]} : vector<16x16xbf16> to vector<1x16xbf16>
    %c13 = arith.constant 13 : index
    %c0_127 = arith.constant 0 : index
    %c0_128 = arith.constant 0 : index
    %191 = vector.load %arg8[%c13, %c0_127, %c0_128] : memref<16x16x256xbf16, #tpu.memory_space<vmem>>, vector<1x16x256xbf16>
    %192 = vector.shape_cast %191 : vector<1x16x256xbf16> to vector<16x256xbf16>
    %cst_129 = arith.constant dense<0.000000e+00> : vector<1x256xf32>
    %193 = tpu.matmul %190, %192, %cst_129 {dimension_numbers = #tpu.dot_dimension_numbers<[1], [0], [0], [1], [0, 0, 1, 1], [], []>} : vector<1x16xbf16>, vector<16x256xbf16>, vector<1x256xf32> -> vector<1x256xf32>
    %194 = arith.addf %189, %193 : vector<1x256xf32>
    %195 = vector.extract_strided_slice %123 {offsets = [14, 0], sizes = [1, 16], strides = [1, 1]} : vector<16x16xbf16> to vector<1x16xbf16>
    %c14 = arith.constant 14 : index
    %c0_130 = arith.constant 0 : index
    %c0_131 = arith.constant 0 : index
    %196 = vector.load %arg8[%c14, %c0_130, %c0_131] : memref<16x16x256xbf16, #tpu.memory_space<vmem>>, vector<1x16x256xbf16>
    %197 = vector.shape_cast %196 : vector<1x16x256xbf16> to vector<16x256xbf16>
    %cst_132 = arith.constant dense<0.000000e+00> : vector<1x256xf32>
    %198 = tpu.matmul %195, %197, %cst_132 {dimension_numbers = #tpu.dot_dimension_numbers<[1], [0], [0], [1], [0, 0, 1, 1], [], []>} : vector<1x16xbf16>, vector<16x256xbf16>, vector<1x256xf32> -> vector<1x256xf32>
    %199 = arith.addf %194, %198 : vector<1x256xf32>
    %200 = vector.extract_strided_slice %123 {offsets = [15, 0], sizes = [1, 16], strides = [1, 1]} : vector<16x16xbf16> to vector<1x16xbf16>
    %c15 = arith.constant 15 : index
    %c0_133 = arith.constant 0 : index
    %c0_134 = arith.constant 0 : index
    %201 = vector.load %arg8[%c15, %c0_133, %c0_134] : memref<16x16x256xbf16, #tpu.memory_space<vmem>>, vector<1x16x256xbf16>
    %202 = vector.shape_cast %201 : vector<1x16x256xbf16> to vector<16x256xbf16>
    %cst_135 = arith.constant dense<0.000000e+00> : vector<1x256xf32>
    %203 = tpu.matmul %200, %202, %cst_135 {dimension_numbers = #tpu.dot_dimension_numbers<[1], [0], [0], [1], [0, 0, 1, 1], [], []>} : vector<1x16xbf16>, vector<16x256xbf16>, vector<1x256xf32> -> vector<1x256xf32>
    %204 = arith.addf %199, %203 : vector<1x256xf32>
    %205 = math.tanh %204 : vector<1x256xf32>
    %206 = arith.truncf %205 : vector<1x256xf32> to vector<1x256xbf16>
    %c0_136 = arith.constant 0 : index
    %c0_137 = arith.constant 0 : index
    %207 = vector.load %arg10[%c0_136, %c0_137] : memref<256x128xbf16, #tpu.memory_space<vmem>>, vector<256x128xbf16>
    %cst_138 = arith.constant dense<0.000000e+00> : vector<1x128xf32>
    %208 = tpu.matmul %206, %207, %cst_138 {dimension_numbers = #tpu.dot_dimension_numbers<[1], [0], [0], [1], [0, 0, 1, 1], [], []>} : vector<1x256xbf16>, vector<256x128xbf16>, vector<1x128xf32> -> vector<1x128xf32>
    %c0_139 = arith.constant 0 : index
    %c0_140 = arith.constant 0 : index
    %209 = vector.load %arg11[%c0_139, %c0_140] : memref<1x128xf32, #tpu.memory_space<vmem>>, vector<1x128xf32>
    %210 = arith.addf %208, %209 : vector<1x128xf32>
    %c0_141 = arith.constant 0 : index
    %c0_142 = arith.constant 0 : index
    %c0_143 = arith.constant 0 : index
    %211 = vector.load %arg12[%c0_141, %c0_142, %c0_143] : memref<1x1x128xf32, #tpu.memory_space<vmem>>, vector<1x1x128xf32>
    %212 = vector.shape_cast %211 : vector<1x1x128xf32> to vector<1x128xf32>
    %213 = vector.shape_cast %210 : vector<1x128xf32> to vector<1x1x128xf32>
    tpu.vector_store %arg12[%c0_141, %c0_142, %c0_143], %213 {strides = array<i32>} : memref<1x1x128xf32, #tpu.memory_space<vmem>>, vector<1x1x128xf32>,
    return
  }
  func.func @transform_0(%arg0: i32) -> (i32, i32, i32) {
    %c0_i32 = arith.constant 0 : i32
    %c0_i32_0 = arith.constant 0 : i32
    %c0_i32_1 = arith.constant 0 : i32
    return %arg0, %c0_i32, %c0_i32_0 : i32, i32, i32
  }
  func.func @transform_1(%arg0: i32) -> (i32, i32, i32) {
    %c0_i32 = arith.constant 0 : i32
    %c0_i32_0 = arith.constant 0 : i32
    %c0_i32_1 = arith.constant 0 : i32
    %c0_i32_2 = arith.constant 0 : i32
    return %c0_i32, %c0_i32_0, %c0_i32_1 : i32, i32, i32
  }
  func.func @transform_2(%arg0: i32) -> (i32, i32) {
    %c0_i32 = arith.constant 0 : i32
    %c0_i32_0 = arith.constant 0 : i32
    %c0_i32_1 = arith.constant 0 : i32
    return %c0_i32, %c0_i32_0 : i32, i32
  }
  func.func @transform_3(%arg0: i32) -> (i32, i32) {
    %c0_i32 = arith.constant 0 : i32
    %c0_i32_0 = arith.constant 0 : i32
    %c0_i32_1 = arith.constant 0 : i32
    return %c0_i32, %c0_i32_0 : i32, i32
  }
  func.func @transform_4(%arg0: i32) -> (i32, i32, i32) {
    %c0_i32 = arith.constant 0 : i32
    %c0_i32_0 = arith.constant 0 : i32
    %c0_i32_1 = arith.constant 0 : i32
    %c0_i32_2 = arith.constant 0 : i32
    return %c0_i32, %c0_i32_0, %c0_i32_1 : i32, i32, i32
  }
  func.func @transform_5(%arg0: i32) -> (i32, i32) {
    %c0_i32 = arith.constant 0 : i32
    %c0_i32_0 = arith.constant 0 : i32
    %c0_i32_1 = arith.constant 0 : i32
    return %c0_i32, %c0_i32_0 : i32, i32
  }
  func.func @transform_6(%arg0: i32) -> (i32, i32) {
    %c0_i32 = arith.constant 0 : i32
    %c0_i32_0 = arith.constant 0 : i32
    %c0_i32_1 = arith.constant 0 : i32
    return %c0_i32, %c0_i32_0 : i32, i32
  }
  func.func @transform_7(%arg0: i32) -> (i32, i32, i32) {
    %c0_i32 = arith.constant 0 : i32
    %c0_i32_0 = arith.constant 0 : i32
    %c0_i32_1 = arith.constant 0 : i32
    %c0_i32_2 = arith.constant 0 : i32
    return %c0_i32, %c0_i32_0, %c0_i32_1 : i32, i32, i32
  }
  func.func @transform_8(%arg0: i32) -> (i32, i32) {
    %c0_i32 = arith.constant 0 : i32
    %c0_i32_0 = arith.constant 0 : i32
    %c0_i32_1 = arith.constant 0 : i32
    return %c0_i32, %c0_i32_0 : i32, i32
  }
  func.func @transform_9(%arg0: i32) -> (i32, i32) {
    %c0_i32 = arith.constant 0 : i32
    %c0_i32_0 = arith.constant 0 : i32
    %c0_i32_1 = arith.constant 0 : i32
    return %c0_i32, %c0_i32_0 : i32, i32
  }
  func.func @transform_10(%arg0: i32) -> (i32, i32) {
    %c0_i32 = arith.constant 0 : i32
    %c0_i32_0 = arith.constant 0 : i32
    %c0_i32_1 = arith.constant 0 : i32
    return %c0_i32, %c0_i32_0 : i32, i32
  }
  func.func @transform_11(%arg0: i32) -> (i32, i32, i32) {
    %c0_i32 = arith.constant 0 : i32
    %c0_i32_0 = arith.constant 0 : i32
    %c0_i32_1 = arith.constant 0 : i32
    return %arg0, %c0_i32, %c0_i32_0 : i32, i32, i32
  }
}

</mosaic_0001>

<bundles_post_ra>
// kernel: cnn_forward.1
= control target key start
LH: loop header
LB: loop body
LE: loop exit
PB: predicated region body
PF: predicated region fallthrough
CT: control target
= control target key end

     0   :  { %s4069_s0 = inlined_call_operand.vmem [shape: bf16[2,8,362], index: 0, kind: input, shape index: {}]   ;;  %s4070_s1 = inlined_call_operand.vmem [shape: bf16[9,8,8], index: 1, kind: input, shape index: {}]   ;;  %s4071_s2 = inlined_call_operand.vmem [shape: f32[8,1], index: 2, kind: input, shape index: {}]   ;;  %s4072_s3 = inlined_call_operand.vmem [shape: bf16[305,122], index: 3, kind: input, shape index: {}]   ;;  %s4073_s4 = inlined_call_operand.vmem [shape: bf16[9,16,8], index: 4, kind: input, shape index: {}]   ;;  %s4074_s5 = inlined_call_operand.vmem [shape: f32[16,1], index: 5, kind: input, shape index: {}]   ;;  %s4075_s6 = inlined_call_operand.vmem [shape: bf16[89,16], index: 6, kind: input, shape index: {}]   ;;  %s4076_s7 = inlined_call_operand.vmem [shape: bf16[16,16,256], index: 7, kind: input, shape index: {}]   ;;  %s4077_s8 = inlined_call_operand.vmem [shape: f32[1,256], index: 8, kind: input, shape index: {}]   ;;  %s4078_s9 = inlined_call_operand.vmem [shape: bf16[256,128], index: 9, kind: input, shape index: {}]   ;;  %s4079_s10 = inlined_call_operand.vmem [shape: f32[1,128], index: 10, kind: input, shape index: {}]   ;;  %s4080_s11 = inlined_call_operand.hbm [shape: f32[2,1,128], index: 11, kind: output, shape index: {}]  }
   0x1   :  { %4085 = sst [smem:[#allocation5_spill]] %s4069_s0 }
   0x2   :  { %16 = vsyncpa [#allocation3], 0 }
   0x3   :  { %18 = vsyncpa [#allocation3 + $0x1], 0  ;;  %s3392_s17 = smov 0   ;;  %s3394_s18 = smov 0  }
   0x4   :  { %s3396_s19 = smov 0   ;;  %s3398_s20 = smov 0  }
   0x5 LB: > { %s3413_s21 = sadd.s32 4294967295, %s3315_s20   ;;  %s2642_s22 = sadd.s32 4294967294, %s3315_s20   ;;  %s3315_s20 = sphi %s3398_s20, %s4095_s20   ;;  %s3311_s19 = sphi %s3396_s19, %s4094_s19   ;;  %s3307_s18 = sphi %s3394_s18, %s4093_s18   ;;  %s3303_s17 = sphi %s3392_s17, %s4092_s17  }
   0x6   : > { %s3417_s23 = sadd.s32 1, %s3315_s20   ;;  %s267_s24 = sadd.s32 1, %s3311_s19 }
   0x7   : > { %s264_s25 = ssub.s32 %s3315_s20, %s3417_s23  ;;  %p277_p0 = scmp.ne.s32.totalorder %s3311_s19, %s3307_s18 }
   0x8   : > { %p265_p1 = scmp.eq.s32.totalorder %s264_s25, 0  ;;  %p278_p2 = scmp.eq.s32.totalorder %s3413_s21, 1 }
   0x9   : > { %p283_p3 = scmp.ne.s32.totalorder %s3307_s18, %s3303_s17  ;;  %p284_p4 = scmp.eq.s32.totalorder %s2642_s22, 1 }
   0xa   : > { %s3428_s26 = scalar_select %p265_p1, %s3311_s19, %s267_s24  }
   0xb   : > { %p3430_p5 = por %p278_p2, %p277_p0  ;;  %p3434_p6 = por %p284_p4, %p283_p3 }
   0xc   : > { %p2645_p7 = scmp.ge.s32.totalorder %s3315_s20, 1  ;;  %p340_p8 = scmp.lt.s32.totalorder %s3315_s20, 3 }
   0xe   : > { %p341_p9 = pnand %p2645_p7, %p340_p8 }
   0xf   : > { %p379_p10 = scmp.lt.s32.totalorder (!%p341_p9), %s3413_s21, 1  ;;  %s4088_s0 = sld [smem:[#allocation5_spill]] (!%p341_p9) }
  0x10   : > { %344 = sbr.rel (%p341_p9) target bundleno = 1877 (0x755), region = 64  ;;  %s4082_s15 = smov (!%p341_p9), 127  }
  0x11   : > { %s4084_s16 = smov (!%p341_p9), 126   ;;  %s3319_s22 = smov (!%p341_p9), 110  }
  0x12   : > { %s3320_s24 = smov (!%p341_p9), 109   ;;  %s4081_s25 = smov (!%p341_p9), 108  }
  0x13   : > { %s3324_s12 = smov (!%p341_p9), 90   ;;  %s4091_s13 = smov (!%p341_p9), 108  }
  0x15   : > { %s380_s29 = scalar_select %p379_p10, %s3413_s21, 1  ;;  %vm411_vm0 = vcmask 1043456   ;;  %vm407_vm1 = vcmask 64512   ;;  %v3471_v9 = vld [vmem:[%s4070_s1] sm:$0xf]  ;;  %vm519_vm2 = vcmask 1031168  }
  0x16   : > { %v2647_v18 = vld [vmem:[%s4070_s1 + $0x4] sm:$0xf]  ;;  %v3487_v19 = vld [vmem:[%s4070_s1 + $0x8] sm:$0xf]  ;;  %vm404_vm3 = vcmask 1039360   ;;  %vm584_vm4 = vcmask 900096  }
  0x17   : > { %s3183_s30 = smul.u32 12, %s380_s29  ;;  %s3322_s29 = smov 92   ;;  %v2658_v38 = vld [vmem:[%s4070_s1 + $0xc] sm:$0xf]  ;;  %vm649_vm5 = vcmask 891904   ;;  %vm714_vm6 = vcmask 883712  }
  0x18   : > { %v2662_v50 = vld [vmem:[%s4070_s1 + $0x10] sm:$0xf]  ;;  %v2666_v52 = vld [vmem:[%s4070_s1 + $0x14] sm:$0xf]  ;;  %vm779_vm7 = vcmask 752640   ;;  %vm844_vm8 = vcmask 744448  }
  0x19   : > { %s383_s14 = scalar_lea.vmem %s4088_s0, %s3183_s30  ;;  %s3323_s30 = smov 91   ;;  %vm909_vm9 = vcmask 736256   ;;  %vm1177_vm10 = vcmask 1040384   ;;  %vm1173_vm11 = vcmask 400384   ;;  %vm1595_vm12 = vcmask 1044480  }
  0x1a   : > { %v386_v0 = vld [vmem:[%s383_s14 + $0x8] sm:$0xf]  ;;  %v385_v1 = vld [vmem:[%s383_s14] sm:$0xff]  ;;  %vm1591_vm13 = vcmask 728064   ;;  %vm1630_vm14 = vcmask 130048  }
  0x1b   : > { %v394_v2 = vunpack.c.l.b16 %v386_v0  ;;  %v392_v3 = vunpack.c.l.b16 %v385_v1  ;;  %v393_v4 = vunpack.c.h.b16 %v385_v1 }
  0x1d   : > { %v397_v5 = vpack.c.b16 %v394_v2, %v394_v2  ;;  %v395_v6 = vpack.c.b16 %v392_v3, %v392_v3  ;;  %v3445_v7 = vpack.c.b16 %v393_v4, %v393_v4 }
  0x1f   : > { %402 = vrot.lane.b32.xlu1 %v397_v5, %s4082_s15  ;;  %398 = vrot.lane.b32.xlu0 %v395_v6, %s4082_s15  ;;  %v464_v8 = vsel %vm411_vm0, %v395_v6, 0  ;;  %v470_v10 = vsel %vm411_vm0, %v397_v5, 0  ;;  %v467_v29 = vsel %vm411_vm0, %v3445_v7, 0 }
  0x20   : > { %515 = vrot.lane.b32.xlu2 %v3445_v7, %s4084_s16  ;;  %479 = vmatpush.bf16.msra.mxu3 %v464_v8 }
  0x21   : > { %505 = vmatpush.bf16.msra.mxu1 %v470_v10 }
  0x23   : > { %2651 = vmatmul.msk.bf16.vlgmr.msra.gmra.mxu3 %vm407_vm1, %v3471_v9 }
  0x24   : > { %2653 = vmatmul.msk.bf16.vlgmr.msra.gmra.mxu1 %vm407_vm1, %v3471_v9 }
  0x27   : > { %400 = vrot.lane.b32.xlu0 %v3445_v7, %s4082_s15  ;;  %513 = vrot.lane.b32.xlu1 %v395_v6, %s4084_s16 }
  0x28   : > { %517 = vrot.lane.b32.xlu2 %v397_v5, %s4084_s16  ;;  %s3329_s16 = smov 106  }
  0x2f   : > { %580 = vrot.lane.b32.xlu0 %v3445_v7, %s3319_s22  ;;  %582 = vrot.lane.b32.xlu1 %v397_v5, %s3319_s22 }
  0x30   : > { %578 = vrot.lane.b32.xlu2 %v395_v6, %s3319_s22 }
  0x37   : > { %647 = vrot.lane.b32.xlu0 %v397_v5, %s3320_s24  ;;  %643 = vrot.lane.b32.xlu1 %v395_v6, %s3320_s24 }
  0x38   : > { %645 = vrot.lane.b32.xlu2 %v3445_v7, %s3320_s24  ;;  %s3326_s24 = smov 118  }
  0x3f   : > { %710 = vrot.lane.b32.xlu1 %v3445_v7, %s4081_s25  ;;  %708 = vrot.lane.b32.xlu0 %v395_v6, %s4081_s25 }
  0x40   : > { %773 = vrot.lane.b32.xlu2 %v395_v6, %s3322_s29 }
  0x47   : > { %712 = vrot.lane.b32.xlu1 %v397_v5, %s4081_s25  ;;  %775 = vrot.lane.b32.xlu0 %v3445_v7, %s3322_s29  ;;  %s3330_s25 = smov 116  }
  0x48   : > { %777 = vrot.lane.b32.xlu2 %v397_v5, %s3322_s29  ;;  %s4089_s29 = smov 126  }
  0x4f   : > { %840 = vrot.lane.b32.xlu0 %v3445_v7, %s3323_s30  ;;  %842 = vrot.lane.b32.xlu1 %v397_v5, %s3323_s30 }
  0x50   : > { %838 = vrot.lane.b32.xlu2 %v395_v6, %s3323_s30  ;;  %s4090_s30 = smov 127  }
  0x57   : > { %907 = vrot.lane.b32.xlu0 %v397_v5, %s3324_s12  ;;  %903 = vrot.lane.b32.xlu1 %v395_v6, %s3324_s12  ;;  %v2670_v6 = vld [vmem:[%s4070_s1 + $0x18] sm:$0xf] }
  0x58   : > { %905 = vrot.lane.b32.xlu2 %v3445_v7, %s3324_s12  ;;  %s3327_s12 = smov 107  }
  0x7a   : > { %v516_v11 = vpop.permute.xlu2 %515 }
  0x82   : > { %v518_v12 = vpop.permute.xlu2 %517 }
  0x83   : > { %v521_v13 = vsel %vm519_vm2, %v516_v11, %v518_v12  ;;  %v532_v45 = vsel %vm411_vm0, %v518_v12, 0 }
  0x84   : > { %v529_v14 = vsel %vm411_vm0, %v521_v13, 0  ;;  %v2674_v13 = vld [vmem:[%s4070_s1 + $0x1c] sm:$0xf] }
  0x85   : > { %554 = vmatpush.bf16.msrb.mxu3 %v529_v14 }
  0x88   : > { %2656 = vmatmul.msk.bf16.vlgmr.msrb.gmra.mxu3 %vm407_vm1, %v3487_v19 }
  0x8a   : > { %v579_v28 = vpop.permute.xlu2 %578 }
  0x91   : > { %v403_v15 = vpop.permute.xlu1 %402  ;;  %v399_v16 = vpop.permute.xlu0 %398 }
  0x92   : > { %v419_v17 = vsel %vm411_vm0, %v403_v15, 0  ;;  %v646_v37 = vpop.permute.xlu2 %645 }
  0x93   : > { %454 = vmatpush.bf16.msra.mxu2 %v419_v17 }
  0x96   : > { %2650 = vmatmul.msk.bf16.vlgmr.msra.gmra.mxu2 %vm407_vm1, %v2647_v18 }
  0x99   : > { %v401_v20 = vpop.permute.xlu0 %400  ;;  %v514_v21 = vpop.permute.xlu1 %513 }
  0x9a   : > { %v405_v22 = vsel %vm404_vm3, %v399_v16, %v401_v20  ;;  %v406_v23 = vsel %vm404_vm3, %v401_v20, %v403_v15  ;;  %v520_v24 = vsel %vm519_vm2, %v514_v21, %v516_v11  ;;  %v774_v44 = vpop.permute.xlu2 %773  ;;  %v2678_v16 = vld [vmem:[%s4070_s1 + $0x20] sm:$0xf] }
  0x9b   : > { %v413_v25 = vsel %vm411_vm0, %v405_v22, 0  ;;  %v416_v26 = vsel %vm411_vm0, %v406_v23, 0  ;;  %v526_v27 = vsel %vm411_vm0, %v520_v24, 0 }
  0x9c   : > { %428 = vmatpush.bf16.msra.mxu0 %v413_v25  ;;  %541 = vmatpush.bf16.msrb.mxu2 %v526_v27 }
  0x9f   : > { %2648 = vmatmul.msk.bf16.vlgmr.msra.gmra.mxu0 %vm407_vm1, %v2647_v18 }
  0xa0   : > { %441 = vmatpush.bf16.msrb.mxu0 %v416_v26 }
  0xa1   : > { %v581_v30 = vpop.permute.xlu0 %580  ;;  %v583_v31 = vpop.permute.xlu1 %582 }
  0xa2   : > { %v585_v32 = vsel %vm584_vm4, %v579_v28, %v581_v30  ;;  %v586_v33 = vsel %vm584_vm4, %v581_v30, %v583_v31  ;;  %v597_v34 = vsel %vm411_vm0, %v583_v31, 0  ;;  %v778_v51 = vpop.permute.xlu2 %777  ;;  %v507_v20 = vpop.f32.mrf.mxu1 }
  0xa3   : > { %v591_v35 = vsel %vm411_vm0, %v585_v32, 0  ;;  %v594_v36 = vsel %vm411_vm0, %v586_v33, 0  ;;  %632 = vmatpush.bf16.msra.mxu3 %v597_v34  ;;  %v792_v15 = vsel %vm411_vm0, %v778_v51, 0 }
  0xa4   : > { %492 = vmatpush.bf16.msra.mxu0 %v467_v29  ;;  %606 = vmatpush.bf16.msrb.mxu1 %v591_v35 }
  0xa5   : > { %619 = vmatpush.bf16.msra.mxu2 %v594_v36 }
  0xa6   : > { %2655 = vmatmul.msk.bf16.vlgmr.msrb.gmra.mxu2 %vm407_vm1, %v3487_v19  ;;  %2661 = vmatmul.msk.bf16.vlgmr.msra.gmra.mxu3 %vm407_vm1, %v2658_v38  ;;  %v481_v21 = vpop.f32.mrf.mxu3 }
  0xa7   : > { %2659 = vmatmul.msk.bf16.vlgmr.msrb.gmra.mxu1 %vm407_vm1, %v2658_v38 }
  0xa9   : > { %v648_v39 = vpop.permute.xlu0 %647  ;;  %v644_v40 = vpop.permute.xlu1 %643 }
  0xaa   : > { %v651_v41 = vsel %vm649_vm5, %v646_v37, %v648_v39  ;;  %v662_v42 = vsel %vm411_vm0, %v648_v39, 0  ;;  %v650_v55 = vsel %vm649_vm5, %v644_v40, %v646_v37  ;;  %v839_v62 = vpop.permute.xlu2 %838  ;;  %v509_v22 = vpop.f32.mrf.mxu1 }
  0xab   : > { %v659_v43 = vsel %vm411_vm0, %v651_v41, 0  ;;  %697 = vmatpush.bf16.msrb.mxu2 %v662_v42  ;;  %v656_v61 = vsel %vm411_vm0, %v650_v55, 0 }
  0xac   : > { %684 = vmatpush.bf16.msra.mxu1 %v659_v43 }
  0xae   : > { %v483_v23 = vpop.f32.mrf.mxu3 }
  0xaf   : > { %2649 = vmatmul.msk.bf16.vlgmr.msrb.gmra.mxu0 %vm407_vm1, %v2647_v18 }
  0xb0   : > { %567 = vmatpush.bf16.msrb.mxu0 %v532_v45 }
  0xb1   : > { %v711_v46 = vpop.permute.xlu1 %710  ;;  %v709_v47 = vpop.permute.xlu0 %708 }
  0xb2   : > { %v715_v48 = vsel %vm714_vm6, %v709_v47, %v711_v46 }
  0xb3   : > { %v721_v49 = vsel %vm411_vm0, %v715_v48, 0 }
  0xb4   : > { %736 = vmatpush.bf16.msrb.mxu3 %v721_v49 }
  0xb6   : > { %2660 = vmatmul.msk.bf16.vlgmr.msra.gmra.mxu2 %vm407_vm1, %v2658_v38 }
  0xb7   : > { %2664 = vmatmul.msk.bf16.vlgmr.msra.gmra.mxu1 %vm407_vm1, %v2662_v50  ;;  %2667 = vmatmul.msk.bf16.vlgmr.msrb.gmra.mxu3 %vm407_vm1, %v2666_v52 }
  0xb9   : > { %v713_v53 = vpop.permute.xlu1 %712  ;;  %v776_v54 = vpop.permute.xlu0 %775 }
  0xba   : > { %v727_v56 = vsel %vm411_vm0, %v713_v53, 0  ;;  %v780_v57 = vsel %vm779_vm7, %v774_v44, %v776_v54  ;;  %v781_v58 = vsel %vm779_vm7, %v776_v54, %v778_v51  ;;  %v716_v7 = vsel %vm714_vm6, %v711_v46, %v713_v53 }
  0xbb   : > { %762 = vmatpush.bf16.msrb.mxu1 %v727_v56  ;;  %v786_v59 = vsel %vm411_vm0, %v780_v57, 0  ;;  %v789_v60 = vsel %vm411_vm0, %v781_v58, 0  ;;  %v724_v8 = vsel %vm411_vm0, %v716_v7, 0 }
  0xbc   : > { %801 = vmatpush.bf16.msra.mxu2 %v786_v59  ;;  %814 = vmatpush.bf16.msra.mxu3 %v789_v60 }
  0xbf   : > { %2652 = vmatmul.msk.bf16.vlgmr.msra.gmra.mxu0 %vm407_vm1, %v3471_v9  ;;  %v906_v9 = vpop.permute.xlu2 %905 }
  0xc0   : > { %671 = vmatpush.bf16.msra.mxu0 %v656_v61 }
  0xc1   : > { %v841_v63 = vpop.permute.xlu0 %840  ;;  %v843_v0 = vpop.permute.xlu1 %842 }
  0xc2   : > { %v845_v1 = vsel %vm844_vm8, %v839_v62, %v841_v63  ;;  %v846_v2 = vsel %vm844_vm8, %v841_v63, %v843_v0  ;;  %v857_v3 = vsel %vm411_vm0, %v843_v0, 0 }
  0xc3   : > { %v851_v4 = vsel %vm411_vm0, %v845_v1, 0  ;;  %892 = vmatpush.bf16.msrb.mxu3 %v857_v3  ;;  %v854_v5 = vsel %vm411_vm0, %v846_v2, 0 }
  0xc4   : > { %866 = vmatpush.bf16.msra.mxu1 %v851_v4 }
  0xc6   : > { %2665 = vmatmul.msk.bf16.vlgmr.msrb.gmra.mxu2 %vm407_vm1, %v2662_v50 }
  0xc7   : > { %2669 = vmatmul.msk.bf16.vlgmr.msrb.gmra.mxu1 %vm407_vm1, %v2666_v52  ;;  %879 = vmatpush.bf16.msrb.mxu2 %v854_v5 }
  0xc8   : > { %2672 = vmatmul.msk.bf16.vlgmr.msra.gmra.mxu3 %vm407_vm1, %v2670_v6 }
  0xc9   : > { %v908_v10 = vpop.permute.xlu0 %907  ;;  %v904_v17 = vpop.permute.xlu1 %903 }
  0xca   : > { %v911_v11 = vsel %vm909_vm9, %v906_v9, %v908_v10  ;;  %v922_v14 = vsel %vm411_vm0, %v908_v10, 0  ;;  %v910_v18 = vsel %vm909_vm9, %v904_v17, %v906_v9 }
  0xcb   : > { %v919_v12 = vsel %vm411_vm0, %v911_v11, 0 }
  0xcc   : > { %944 = vmatpush.bf16.msrb.mxu1 %v919_v12 }
  0xcf   : > { %2657 = vmatmul.msk.bf16.vlgmr.msrb.gmra.mxu0 %vm407_vm1, %v3487_v19  ;;  %v916_v19 = vsel %vm411_vm0, %v910_v18, 0 }
  0xd0   : > { %749 = vmatpush.bf16.msrb.mxu0 %v724_v8 }
  0xd6   : > { %2671 = vmatmul.msk.bf16.vlgmr.msra.gmra.mxu2 %vm407_vm1, %v2670_v6 }
  0xd7   : > { %2675 = vmatmul.msk.bf16.vlgmr.msra.gmra.mxu1 %vm407_vm1, %v2674_v13  ;;  %957 = vmatpush.bf16.msra.mxu2 %v922_v14 }
  0xd8   : > { %2677 = vmatmul.msk.bf16.vlgmr.msrb.gmra.mxu3 %vm407_vm1, %v2674_v13 }
  0xdf   : > { %2663 = vmatmul.msk.bf16.vlgmr.msra.gmra.mxu0 %vm407_vm1, %v2662_v50 }
  0xe0   : > { %827 = vmatpush.bf16.msra.mxu0 %v792_v15 }
  0xe6   : > { %2676 = vmatmul.msk.bf16.vlgmr.msrb.gmra.mxu2 %vm407_vm1, %v2674_v13 }
  0xe7   : > { %2680 = vmatmul.msk.bf16.vlgmr.msrb.gmra.mxu1 %vm407_vm1, %v2678_v16 }
  0xef   : > { %2668 = vmatmul.msk.bf16.vlgmr.msrb.gmra.mxu0 %vm407_vm1, %v2666_v52 }
  0xf0   : > { %931 = vmatpush.bf16.msrb.mxu0 %v916_v19 }
  0xf6   : > { %2681 = vmatmul.msk.bf16.vlgmr.msra.gmra.mxu2 %vm407_vm1, %v2678_v16 }
  0xff   : > { %2673 = vmatmul.msk.bf16.vlgmr.msra.gmra.mxu0 %vm407_vm1, %v2670_v6 }
 0x10b   : > { %v556_v28 = vpop.f32.mrf.mxu3 }
 0x10f   : > { %2679 = vmatmul.msk.bf16.vlgmr.msrb.gmra.mxu0 %vm407_vm1, %v2678_v16 }
 0x113   : > { %v558_v32 = vpop.f32.mrf.mxu3 }
 0x119   : > { %v456_v24 = vpop.f32.mrf.mxu2 }
 0x11a   : > { %v508_v25 = vadd.f32 %v507_v20, %v456_v24 }
 0x11c   : > { %v430_v26 = vpop.f32.mrf.mxu0 }
 0x11d   : > { %v482_v27 = vadd.f32 %v481_v21, %v430_v26 }
 0x121   : > { %v458_v29 = vpop.f32.mrf.mxu2 }
 0x124   : > { %v432_v30 = vpop.f32.mrf.mxu0  ;;  %v608_v31 = vpop.f32.mrf.mxu1 }
 0x129   : > { %v543_v33 = vpop.f32.mrf.mxu2  ;;  %v634_v38 = vpop.f32.mrf.mxu3 }
 0x12a   : > { %v573_v34 = vadd.f32 %v543_v33, %v482_v27 }
 0x12c   : > { %v638_v35 = vadd.f32 %v608_v31, %v573_v34  ;;  %v443_v36 = vpop.f32.mrf.mxu0  ;;  %v610_v37 = vpop.f32.mrf.mxu1 }
 0x131   : > { %v545_v39 = vpop.f32.mrf.mxu2  ;;  %v636_v42 = vpop.f32.mrf.mxu3 }
 0x132   : > { %v3325_v39 = vmov 0  }
 0x133   : > { %3238 = vset.pattern.permute.xlu2 %v3325_v39  ;;  %3239 = vset.pattern.permute.xlu1 %v3325_v39 }
 0x134   : > { %v445_v40 = vpop.f32.mrf.mxu0  ;;  %v686_v41 = vpop.f32.mrf.mxu1  ;;  %3240 = vset.pattern.permute.xlu0 %v3325_v39 }
 0x139   : > { %v621_v43 = vpop.f32.mrf.mxu2 }
 0x13a   : > { %v738_v46 = vpop.f32.mrf.mxu3 }
 0x13c   : > { %v494_v44 = vpop.f32.mrf.mxu0  ;;  %v688_v45 = vpop.f32.mrf.mxu1 }
 0x13d   : > { %v495_v2 = vadd.f32 %v494_v44, %v443_v36  ;;  %v3108_v44 = vld [vmem:[%s4072_s3 + $0x38] sm:$0xff] }
 0x13e   : > { %v3116_v45 = vld [vmem:[%s4072_s3 + $0x78] sm:$0xff]  ;;  %1183 = vmatpush.bf16.msra.mxu3 %v3108_v44 }
 0x13f   : > { %v574_v5 = vadd.f32 %v556_v28, %v495_v2  ;;  %1196 = vmatpush.bf16.msra.mxu0 %v3116_v45  ;;  %v3117_v2 = vld [vmem:[%s4072_s3 + $0x80] sm:$0xff] }
 0x141   : > { %v623_v47 = vpop.f32.mrf.mxu2  ;;  %v639_v9 = vadd.f32 %v621_v43, %v574_v5 }
 0x142   : > { %v740_v50 = vpop.f32.mrf.mxu3  ;;  %v3115_v47 = vld [vmem:[%s4072_s3 + $0x70] sm:$0xff] }
 0x143   : > { %v704_v11 = vadd.f32 %v686_v41, %v639_v9  ;;  %1197 = vmatpush.bf16.msra.mxu0 %v3115_v47  ;;  %v3105_v50 = vld [vmem:[%s4072_s3 + $0x20] sm:$0xff] }
 0x144   : > { %v496_v48 = vpop.f32.mrf.mxu0  ;;  %v764_v49 = vpop.f32.mrf.mxu1 }
 0x145   : > { %v3106_v48 = vld [vmem:[%s4072_s3 + $0x28] sm:$0xff] }
 0x149   : > { %v699_v51 = vpop.f32.mrf.mxu2 }
 0x14b   : > { %v816_v55 = vpop.f32.mrf.mxu3 }
 0x14c   : > { %v569_v52 = vpop.f32.mrf.mxu0  ;;  %v766_v53 = vpop.f32.mrf.mxu1 }
 0x14d   : > { %v575_v54 = vadd.f32 %v569_v52, %v508_v25  ;;  %v1055_v52 = vld [vmem:[%s4072_s3 + $0x98] sm:$0x1] }
 0x14e   : > { %v1133_v53 = vunpack.c.l.b16 %v1055_v52 }
 0x14f   : > { %v640_v56 = vadd.f32 %v634_v38, %v575_v54  ;;  %v1002_v38 = vld [vmem:[%s4071_s2] sm:$0xff]  ;;  %v1179_v54 = vsel %vm1177_vm10, 65535, %v3325_v39 }
 0x151   : > { %v701_v57 = vpop.f32.mrf.mxu2  ;;  %v705_v20 = vadd.f32 %v699_v51, %v640_v56  ;;  %v3104_v51 = vld [vmem:[%s4072_s3 + $0x18] sm:$0xff]  ;;  %v3113_v56 = vld [vmem:[%s4072_s3 + $0x60] sm:$0xff] }
 0x152   : > { %v1153_v57 = vpack.c.b16 %v1133_v53, %v1133_v53  ;;  %v3127_v53 = vld [vmem:[%s4073_s4 + $0x38] sm:$0xff] }
 0x153   : > { %v818_v60 = vpop.f32.mrf.mxu3  ;;  %v770_v22 = vadd.f32 %v764_v49, %v705_v20  ;;  %v3114_v49 = vld [vmem:[%s4072_s3 + $0x68] sm:$0xff] }
 0x154   : > { %v571_v58 = vpop.f32.mrf.mxu0  ;;  %v868_v59 = vpop.f32.mrf.mxu1  ;;  %1198 = vmatpush.bf16.msra.mxu0 %v3114_v49  ;;  %v3112_v60 = vld [vmem:[%s4072_s3 + $0x58] sm:$0xff] }
 0x155   : > { %v1181_v58 = vand.u32 %v1179_v54, %v1153_v57  ;;  %v3128_v57 = vld [vmem:[%s4073_s4 + $0x40] sm:$0xff] }
 0x157   : > { %1213 = vmatpush.bf16.msra.mxu1 %v1181_v58  ;;  %v3126_v58 = vld [vmem:[%s4073_s4 + $0x30] sm:$0xff] }
 0x158   : > { %1199 = vmatpush.bf16.msra.mxu0 %v3113_v56  ;;  %v3125_v56 = vld [vmem:[%s4073_s4 + $0x28] sm:$0xff] }
 0x159   : > { %v803_v61 = vpop.f32.mrf.mxu2 }
 0x15b   : > { %v894_v1 = vpop.f32.mrf.mxu3 }
 0x15c   : > { %v673_v62 = vpop.f32.mrf.mxu0  ;;  %v870_v63 = vpop.f32.mrf.mxu1  ;;  %1200 = vmatpush.bf16.msra.mxu0 %v3112_v60 }
 0x15d   : > { %v703_v0 = vadd.f32 %v673_v62, %v638_v35  ;;  %v3101_v62 = vld [vmem:[%s4072_s3] sm:$0xff]  ;;  %v3111_v63 = vld [vmem:[%s4072_s3 + $0x50] sm:$0xff] }
 0x15f   : > { %v768_v3 = vadd.f32 %v738_v46, %v703_v0  ;;  %v3107_v46 = vld [vmem:[%s4072_s3 + $0x30] sm:$0xff]  ;;  %v3118_v0 = vld [vmem:[%s4072_s3 + $0x88] sm:$0xff] }
 0x160   : > { %1184 = vmatpush.bf16.msra.mxu3 %v3107_v46  ;;  %1201 = vmatpush.bf16.msra.mxu0 %v3111_v63 }
 0x161   : > { %v805_v4 = vpop.f32.mrf.mxu2  ;;  %v833_v29 = vadd.f32 %v803_v61, %v768_v3  ;;  %v3119_v61 = vld [vmem:[%s4072_s3 + $0x90] sm:$0xff]  ;;  %v3109_v3 = vld [vmem:[%s4072_s3 + $0x40] sm:$0xff] }
 0x162   : > { %1214 = vmatpush.bf16.msra.mxu1 %v3119_v61 }
 0x163   : > { %v896_v8 = vpop.f32.mrf.mxu3  ;;  %v898_v30 = vadd.f32 %v868_v59, %v833_v29  ;;  %v3102_v59 = vld [vmem:[%s4072_s3 + $0x8] sm:$0xff] }
 0x164   : > { %v675_v6 = vpop.f32.mrf.mxu0  ;;  %v946_v7 = vpop.f32.mrf.mxu1  ;;  %1185 = vmatpush.bf16.msra.mxu3 %v3106_v48 }
 0x166   : > { %1215 = vmatpush.bf16.msra.mxu1 %v3118_v0 }
 0x168   : > { %1186 = vmatpush.bf16.msra.mxu3 %v3105_v50  ;;  %v3124_v50 = vld [vmem:[%s4073_s4 + $0x20] sm:$0xff] }
 0x169   : > { %v881_v10 = vpop.f32.mrf.mxu2 }
 0x16a   : > { %1216 = vmatpush.bf16.msra.mxu1 %v3117_v2 }
 0x16c   : > { %v751_v12 = vpop.f32.mrf.mxu0  ;;  %v948_v13 = vpop.f32.mrf.mxu1  ;;  %1187 = vmatpush.bf16.msra.mxu3 %v3104_v51 }
 0x16d   : > { %v769_v14 = vadd.f32 %v751_v12, %v704_v11 }
 0x16f   : > { %v834_v15 = vadd.f32 %v816_v55, %v769_v14  ;;  %v3103_v55 = vld [vmem:[%s4072_s3 + $0x10] sm:$0xff] }
 0x170   : > { %1188 = vmatpush.bf16.msra.mxu3 %v3103_v55  ;;  %v3122_v55 = vld [vmem:[%s4073_s4 + $0x10] sm:$0xff] }
 0x171   : > { %v899_v16 = vadd.f32 %v881_v10, %v834_v15  ;;  %v883_v17 = vpop.f32.mrf.mxu2 }
 0x173   : > { %v964_v18 = vadd.f32 %v946_v7, %v899_v16 }
 0x174   : > { %v753_v19 = vpop.f32.mrf.mxu0  ;;  %1189 = vmatpush.bf16.msra.mxu3 %v3102_v59 }
 0x175   : > { %971 = vrot.lane.b32.xlu1 %v964_v18, %s4082_s15 }
 0x178   : > { %1190 = vmatpush.bf16.msra.mxu3 %v3101_v62 }
 0x179   : > { %v959_v21 = vpop.f32.mrf.mxu2 }
 0x17c   : > { %v829_v23 = vpop.f32.mrf.mxu0 }
 0x17d   : > { %v835_v24 = vadd.f32 %v829_v23, %v770_v22 }
 0x17f   : > { %v900_v25 = vadd.f32 %v894_v1, %v835_v24  ;;  %v3110_v1 = vld [vmem:[%s4072_s3 + $0x48] sm:$0xff] }
 0x180   : > { %1202 = vmatpush.bf16.msra.mxu0 %v3110_v1 }
 0x181   : > { %v965_v26 = vadd.f32 %v959_v21, %v900_v25  ;;  %v961_v27 = vpop.f32.mrf.mxu2 }
 0x183   : > { %973 = vrot.lane.b32.xlu2 %v965_v26, %s4082_s15 }
 0x184   : > { %v831_v28 = vpop.f32.mrf.mxu0  ;;  %1203 = vmatpush.bf16.msra.mxu0 %v3109_v3 }
 0x18b   : > { %1005 = vperm.xlu2 %3238, %v1002_v38  }
 0x18c   : > { %v933_v31 = vpop.f32.mrf.mxu0 }
 0x18d   : > { %v963_v32 = vadd.f32 %v933_v31, %v898_v30 }
 0x18f   : > { %969 = vrot.lane.b32.xlu0 %v963_v32, %s4082_s15  ;;  %s3328_s15 = smov 117  }
 0x194   : > { %v935_v33 = vpop.f32.mrf.mxu0 }
 0x1dd   : > { %v974_v34 = vpop.permute.xlu2 %973 }
 0x1de   : > { %v983_v43 = vmax.f32 %v965_v26, %v974_v34 }
 0x1e5   : > { %v1006_v7 = vpop.permute.xlu2 %1005 }
 0x1e7   : > { %v972_v35 = vpop.permute.xlu1 %971 }
 0x1e8   : > { %v977_v36 = vsel %vm404_vm3, %v972_v35, %v974_v34  ;;  %v3120_v34 = vld [vmem:[%s4073_s4] sm:$0xff] }
 0x1e9   : > { %v3575_v37 = vmax.f32 %v964_v18, %v977_v36 }
 0x1eb   : > { %989 = vrot.lane.b32.xlu1 %v3575_v37, %s3319_s22 }
 0x201   : > { %v970_v40 = vpop.permute.xlu0 %969 }
 0x202   : > { %v976_v41 = vsel %vm404_vm3, %v970_v40, %v972_v35  ;;  %v3123_v40 = vld [vmem:[%s4073_s4 + $0x18] sm:$0xff] }
 0x203   : > { %v981_v42 = vmax.f32 %v963_v32, %v976_v41 }
 0x205   : > { %987 = vrot.lane.b32.xlu0 %v981_v42, %s3319_s22 }
 0x20d   : > { %991 = vrot.lane.b32.xlu0 %v983_v43, %s3319_s22 }
 0x25d   : > { %v990_v4 = vpop.permute.xlu1 %989 }
 0x277   : > { %v988_v5 = vpop.permute.xlu0 %987 }
 0x278   : > { %v994_v6 = vsel %vm584_vm4, %v988_v5, %v990_v4 }
 0x279   : > { %v999_v8 = vmax.f32 %v981_v42, %v994_v6  ;;  %v3121_v42 = vld [vmem:[%s4073_s4 + $0x8] sm:$0xff] }
 0x27b   : > { %v1008_v9 = vadd.f32 %v1006_v7, %v999_v8 }
 0x27d   : > { %3241 = vtanh.f32 %v1008_v9 }
 0x27f   : > { %v992_v10 = vpop.permute.xlu0 %991 }
 0x280   : > { %v995_v11 = vsel %vm584_vm4, %v990_v4, %v992_v10  ;;  %v1001_v12 = vmax.f32 %v983_v43, %v992_v10 }
 0x281   : > { %v1000_v13 = vmax.f32 %v3575_v37, %v995_v11 }
 0x282   : > { %v1010_v14 = vadd.f32 %v1006_v7, %v1001_v12 }
 0x283   : > { %v3242_v15 = vpop.eup %3241  ;;  %v1009_v16 = vadd.f32 %v1006_v7, %v1000_v13 }
 0x284   : > { %v1014_v17 = vpack.c.bf16 %v3242_v15, %v3242_v15  ;;  %3243 = vtanh.f32 %v1010_v14 }
 0x285   : > { %3245 = vtanh.f32 %v1009_v16 }
 0x286   : > { %1191 = vmatmul.bf16.vlgmr.msra.gmra.mxu3 %v1014_v17 }
 0x28a   : > { %v3244_v18 = vpop.eup %3243 }
 0x28b   : > { %v3246_v19 = vpop.eup %3245  ;;  %v1016_v20 = vpack.c.bf16 %v3244_v18, %v3244_v18 }
 0x28c   : > { %v1015_v21 = vpack.c.bf16 %v3246_v19, %v3246_v19 }
 0x28d   : > { %2758 = vmatmul.msk.bf16.vlgmr.msra.gmra.mxu1 %vm1173_vm11, %v1016_v20 }
 0x28e   : > { %1204 = vmatmul.bf16.vlgmr.msra.gmra.mxu0 %v1015_v21 }
 0x309   : > { %v1192_v22 = vpop.f32.mrf.mxu3 }
 0x30a   : > { %v1218_v23 = vpop.f32.mrf.mxu1 }
 0x30b   : > { %v1205_v24 = vpop.f32.mrf.mxu0 }
 0x30c   : > { %v1206_v25 = vadd.f32 %v1205_v24, %v1192_v22 }
 0x30e   : > { %v1219_v26 = vadd.f32 %v1218_v23, %v1206_v25 }
 0x310   : > { %v1222_v27 = vpack.c.bf16 %v1219_v26, %v1219_v26 }
 0x311   : > { %v1194_v28 = vpop.f32.mrf.mxu3 }
 0x312   : > { %v1234_v29 = vunpack.c.l.b16 %v1222_v27  ;;  %v1220_v30 = vpop.f32.mrf.mxu1  ;;  %v1267_v31 = vsel %vm411_vm0, %v1222_v27, 0 }
 0x313   : > { %v1207_v32 = vpop.f32.mrf.mxu0  ;;  %1276 = vmatpush.bf16.msrb.mxu1 %v1267_v31 }
 0x314   : > { %v1235_v33 = vpack.c.b16 %v1234_v29, %v1234_v29  ;;  %v1527_v29 = vld [vmem:[%s4074_s5] sm:$0xff] }
 0x316   : > { %1323 = vrot.lane.b32.xlu0 %v1235_v33, %s3326_s24  ;;  %1291 = vrot.lane.b32.xlu2 %v1235_v33, %s4089_s29 }
 0x317   : > { %1236 = vrot.lane.b32.xlu1 %v1235_v33, %s4090_s30  ;;  %2770 = vmatmul.msk.bf16.vlgmr.msrb.gmra.mxu1 %vm407_vm1, %v3120_v34 }
 0x31e   : > { %1451 = vrot.lane.b32.xlu0 %v1235_v33, %s3327_s12  ;;  %1419 = vrot.lane.b32.xlu2 %v1235_v33, %s4091_s13 }
 0x31f   : > { %1355 = vrot.lane.b32.xlu1 %v1235_v33, %s3328_s15  ;;  %s2583_s15 = scalar_lea.hbm %s4080_s11, %s3413_s21 }
 0x320   : > { %s2587_s22 = sshll.u32 %s2583_s15, 4  ;;  %s2588_s22 = int_to_ptr.hbm [resolvable:$true] %s2587_s22 }
 0x321   : > { %s3267_s0 = sshra.s32 %s2588_s22, 4  ;;  %s3268_s0 = int_to_ptr.hbm [resolvable:$true] %s3267_s0 }
 0x322   : > { %s3269_s12 = scalar_lea.hbm %s3268_s0, 1  ;;  %p3274_p0 = scmp.lt.s32.totalorder %s3268_s0, %s4080_s11 }
 0x323   : > { %p3270_p11 = scmp.ne.s32.totalorder %s3268_s0, %s3269_s12 }
 0x325   : > { %p3271_p12 = pnand %p3270_p11, %p3430_p5 }
 0x326   : > { %1483 = vrot.lane.b32.xlu2 %v1235_v33, %s3329_s16  ;;  %s3273_s16 = scalar_lea.hbm %s4080_s11, 2 }
 0x327   : > { %1387 = vrot.lane.b32.xlu1 %v1235_v33, %s3330_s25  ;;  %v1528_v33 = vld [vmem:[%s4074_s5 + $0x8] sm:$0xff]  ;;  %p3272_p13 = pneg %p3271_p12  ;;  %p3275_p1 = scmp.lt.s32.totalorder %s3273_s16, %s3269_s12 }
 0x329   : > { %p3276_p2 = por %p3275_p1, %p3274_p0 }
 0x32b   : > { %p3277_p3 = pnand %p3276_p2, %p3272_p13 }
 0x370   : > { %v1292_v35 = vpop.permute.xlu2 %1291 }
 0x371   : > { %v1297_v43 = vsel %vm411_vm0, %v1292_v35, 0  ;;  %v2842_v35 = vld [vmem:[%s4075_s6 + $0x28] sm:$0xf] }
 0x378   : > { %v1420_v36 = vpop.permute.xlu2 %1419 }
 0x379   : > { %v1425_v44 = vsel %vm411_vm0, %v1420_v36, 0  ;;  %v3134_v36 = vld [vmem:[%s4075_s6 + $0x28] sm:$0x10] }
 0x380   : > { %v1484_v45 = vpop.permute.xlu2 %1483 }
 0x381   : > { %v1489_v51 = vsel %vm411_vm0, %v1484_v45, 0  ;;  %v3130_v45 = vld [vmem:[%s4075_s6 + $0x8] sm:$0xff] }
 0x388   : > { %v1324_v37 = vpop.permute.xlu0 %1323 }
 0x389   : > { %v1329_v38 = vsel %vm411_vm0, %v1324_v37, 0  ;;  %v1237_v39 = vpop.permute.xlu1 %1236  ;;  %v2843_v37 = vor.u32 %v3134_v36, %v2842_v35  ;;  %v3145_v36 = vld [vmem:[%s4076_s7 + $0x54] sm:$0xf] }
 0x38a   : > { %v1242_v41 = vsel %vm411_vm0, %v1237_v39, 0  ;;  %1338 = vmatpush.bf16.msrb.mxu3 %v1329_v38  ;;  %v3331_v38 = vmov 65535  }
 0x38b   : > { %1251 = vmatpush.bf16.msrb.mxu2 %v1242_v41  ;;  %v1596_v39 = vsel %vm411_vm0, 4294967295, %v3331_v38  ;;  %v2919_v38 = vld [vmem:[%s4076_s7 + $0x60] sm:$0xf] }
 0x38d   : > { %2784 = vmatmul.msk.bf16.vlgmr.msrb.gmra.mxu3 %vm407_vm1, %v3123_v40  ;;  %v1597_v40 = vsel %vm1595_vm12, %v1596_v39, 0  ;;  %v3148_v39 = vld [vmem:[%s4076_s7 + $0x64] sm:$0xf0] }
 0x38e   : > { %2765 = vmatmul.msk.bf16.vlgmr.msrb.gmra.mxu2 %vm407_vm1, %v3121_v42  ;;  %v1599_v41 = vand.u32 %v2843_v37, %v1597_v40  ;;  %v3133_v42 = vld [vmem:[%s4075_s6 + $0x20] sm:$0xff]  ;;  %v2909_v37 = vld [vmem:[%s4076_s7 + $0x58] sm:$0xf0] }
 0x38f   : > { %1306 = vmatpush.bf16.msra.mxu2 %v1297_v43  ;;  %v3132_v43 = vld [vmem:[%s4075_s6 + $0x18] sm:$0xff]  ;;  %v2912_v40 = vor.u32 %v3145_v36, %v2909_v37  ;;  %v3027_v37 = vld [vmem:[%s4076_s7 + $0xf0] sm:$0xf] }
 0x390   : > { %v1452_v46 = vpop.permute.xlu0 %1451 }
 0x391   : > { %v1457_v47 = vsel %vm411_vm0, %v1452_v46, 0  ;;  %v1356_v48 = vpop.permute.xlu1 %1355  ;;  %v3129_v46 = vld [vmem:[%s4075_s6] sm:$0xff] }
 0x392   : > { %v1361_v49 = vsel %vm411_vm0, %v1356_v48, 0  ;;  %1466 = vmatpush.bf16.msra.mxu3 %v1457_v47 }
 0x393   : > { %1434 = vmatpush.bf16.msrb.mxu2 %v1425_v44  ;;  %1370 = vmatpush.bf16.msrb.mxu0 %v1361_v49  ;;  %v3131_v44 = vld [vmem:[%s4075_s6 + $0x10] sm:$0xff] }
 0x394   : > { %v1278_v60 = vpop.f32.mrf.mxu1 }
 0x396   : > { %2791 = vmatmul.msk.bf16.vlgmr.msrb.gmra.mxu0 %vm407_vm1, %v3124_v50 }
 0x397   : > { %1498 = vmatpush.bf16.msra.mxu0 %v1489_v51 }
 0x399   : > { %v1388_v52 = vpop.permute.xlu1 %1387 }
 0x39a   : > { %v1393_v54 = vsel %vm411_vm0, %v1388_v52, 0 }
 0x39b   : > { %1402 = vmatpush.bf16.msra.mxu1 %v1393_v54 }
 0x39c   : > { %v1280_v2 = vpop.f32.mrf.mxu1 }
 0x39d   : > { %2812 = vmatmul.msk.bf16.vlgmr.msra.gmra.mxu3 %vm407_vm1, %v3127_v53 }
 0x39e   : > { %2777 = vmatmul.msk.bf16.vlgmr.msra.gmra.mxu2 %vm407_vm1, %v3122_v55  ;;  %2798 = vmatmul.msk.bf16.vlgmr.msra.gmra.mxu1 %vm407_vm1, %v3125_v56 }
 0x39f   : > { %1603 = vmatpush.bf16.msrb.mxu1 %v1599_v41  ;;  %v2920_v41 = vor.u32 %v3148_v39, %v2919_v38  ;;  %v3166_v38 = vld [vmem:[%s4076_s7 + $0xf4] sm:$0xf0] }
 0x3a0   : > { %v3028_v39 = vor.u32 %v3166_v38, %v3027_v37 }
 0x3a3   : > { %1604 = vmatpush.bf16.msrb.mxu1 %v3133_v42  ;;  %v2931_v42 = vld [vmem:[%s4076_s7 + $0x70] sm:$0xf] }
 0x3a6   : > { %2819 = vmatmul.msk.bf16.vlgmr.msra.gmra.mxu0 %vm407_vm1, %v3128_v57 }
 0x3a7   : > { %1605 = vmatpush.bf16.msrb.mxu1 %v3132_v43  ;;  %v3150_v43 = vld [vmem:[%s4076_s7 + $0x74] sm:$0xf0] }
 0x3ab   : > { %1606 = vmatpush.bf16.msrb.mxu1 %v3131_v44  ;;  %v3151_v44 = vld [vmem:[%s4076_s7 + $0x84] sm:$0xf] }
 0x3ae   : > { %2805 = vmatmul.msk.bf16.vlgmr.msrb.gmra.mxu2 %vm407_vm1, %v3126_v58  ;;  %v2847_v58 = vld [vmem:[%s4076_s7] sm:$0xf] }
 0x3af   : > { %1607 = vmatpush.bf16.msrb.mxu1 %v3130_v45  ;;  %v2945_v45 = vld [vmem:[%s4076_s7 + $0x88] sm:$0xf0] }
 0x3b3   : > { %1608 = vmatpush.bf16.msrb.mxu1 %v3129_v46  ;;  %v2932_v46 = vor.u32 %v3150_v43, %v2931_v42  ;;  %v3165_v42 = vld [vmem:[%s4076_s7 + $0xf4] sm:$0xf]  ;;  %v3029_v43 = vld [vmem:[%s4076_s7 + $0xf8] sm:$0xf0] }
 0x410   : > { %v1340_v62 = vpop.f32.mrf.mxu3 }
 0x411   : > { %v1253_v59 = vpop.f32.mrf.mxu2 }
 0x412   : > { %v1279_v1 = vadd.f32 %v1278_v60, %v1253_v59  ;;  %v3136_v59 = vld [vmem:[%s4076_s7 + $0x4] sm:$0xf0]  ;;  %v3135_v60 = vld [vmem:[%s4076_s7 + $0x4] sm:$0xf] }
 0x413   : > { %v1372_v63 = vpop.f32.mrf.mxu0 }
 0x418   : > { %v1342_v4 = vpop.f32.mrf.mxu3 }
 0x419   : > { %v1255_v61 = vpop.f32.mrf.mxu2 }
 0x41a   : > { %v1281_v8 = vadd.f32 %v1280_v2, %v1255_v61  ;;  %v2848_v61 = vor.u32 %v3136_v59, %v2847_v58  ;;  %v3139_v2 = vld [vmem:[%s4076_s7 + $0x24] sm:$0xf]  ;;  %v2969_v59 = vld [vmem:[%s4076_s7 + $0xa8] sm:$0xf0] }
 0x41b   : > { %v1374_v7 = vpop.f32.mrf.mxu0  ;;  %v1404_v9 = vpop.f32.mrf.mxu1  ;;  %v3155_v58 = vld [vmem:[%s4076_s7 + $0xa4] sm:$0xf] }
 0x41c   : > { %1641 = vmatpush.bf16.msra.mxu2 %v2848_v61  ;;  %v2972_v61 = vor.u32 %v3155_v58, %v2969_v59  ;;  %v1617_v58 = vld [vmem:[%s4077_s8] sm:$0x3] }
 0x420   : > { %v1468_v15 = vpop.f32.mrf.mxu3 }
 0x421   : > { %v1308_v0 = vpop.f32.mrf.mxu2 }
 0x422   : > { %v1313_v3 = vadd.f32 %v1308_v0, %v1279_v1  ;;  %v2859_v0 = vld [vmem:[%s4076_s7 + $0x10] sm:$0xf]  ;;  %v3138_v1 = vld [vmem:[%s4076_s7 + $0x14] sm:$0xf0] }
 0x423   : > { %v1500_v17 = vpop.f32.mrf.mxu0  ;;  %v1406_v20 = vpop.f32.mrf.mxu1 }
 0x424   : > { %v1345_v5 = vadd.f32 %v1340_v62, %v1313_v3  ;;  %v2849_v62 = vld [vmem:[%s4076_s7 + $0x8] sm:$0xf0]  ;;  %v2860_v3 = vor.u32 %v3138_v1, %v2859_v0  ;;  %v3153_v0 = vld [vmem:[%s4076_s7 + $0x94] sm:$0xf]  ;;  %v2957_v1 = vld [vmem:[%s4076_s7 + $0x98] sm:$0xf0] }
 0x426   : > { %v1377_v10 = vadd.f32 %v1372_v63, %v1345_v5  ;;  %v2852_v63 = vor.u32 %v3135_v60, %v2849_v62  ;;  %1695 = vmatpush.bf16.msrb.mxu0 %v2860_v3  ;;  %v3156_v3 = vld [vmem:[%s4076_s7 + $0xa4] sm:$0xf0] }
 0x428   : > { %v1409_v12 = vadd.f32 %v1404_v9, %v1377_v10  ;;  %v1470_v25 = vpop.f32.mrf.mxu3  ;;  %1654 = vmatpush.bf16.msrb.mxu3 %v2852_v63  ;;  %v3140_v10 = vld [vmem:[%s4076_s7 + $0x24] sm:$0xf0] }
 0x429   : > { %v1310_v6 = vpop.f32.mrf.mxu2 }
 0x42a   : > { %v1314_v11 = vadd.f32 %v1310_v6, %v1281_v8  ;;  %v3137_v6 = vld [vmem:[%s4076_s7 + $0x14] sm:$0xf]  ;;  %v2871_v8 = vld [vmem:[%s4076_s7 + $0x20] sm:$0xf] }
 0x42b   : > { %v1502_v27 = vpop.f32.mrf.mxu0 }
 0x42c   : > { %v1346_v13 = vadd.f32 %v1342_v4, %v1314_v11  ;;  %v2873_v4 = vld [vmem:[%s4076_s7 + $0x28] sm:$0xf0]  ;;  %v2872_v11 = vor.u32 %v3140_v10, %v2871_v8  ;;  %v3159_v8 = vld [vmem:[%s4076_s7 + $0xc4] sm:$0xf] }
 0x42d   : > { %v2876_v5 = vor.u32 %v3139_v2, %v2873_v4  ;;  %v2967_v2 = vld [vmem:[%s4076_s7 + $0xa0] sm:$0xf]  ;;  %v2960_v4 = vor.u32 %v3153_v0, %v2957_v1  ;;  %v2993_v10 = vld [vmem:[%s4076_s7 + $0xc8] sm:$0xf0] }
 0x42e   : > { %v1378_v18 = vadd.f32 %v1374_v7, %v1346_v13  ;;  %v2861_v7 = vld [vmem:[%s4076_s7 + $0x18] sm:$0xf0]  ;;  %1744 = vmatpush.bf16.msra.mxu3 %v2872_v11  ;;  %v3142_v13 = vld [vmem:[%s4076_s7 + $0x34] sm:$0xf0] }
 0x42f   : > { %1757 = vmatpush.bf16.msra.mxu1 %v2876_v5  ;;  %v2864_v9 = vor.u32 %v3137_v6, %v2861_v7  ;;  %v2968_v5 = vor.u32 %v3156_v3, %v2967_v2  ;;  %v2979_v6 = vld [vmem:[%s4076_s7 + $0xb0] sm:$0xf]  ;;  %v3158_v7 = vld [vmem:[%s4076_s7 + $0xb4] sm:$0xf0] }
 0x430   : > { %v1410_v22 = vadd.f32 %v1406_v20, %v1378_v18  ;;  %v3141_v18 = vld [vmem:[%s4076_s7 + $0x34] sm:$0xf]  ;;  %v2895_v20 = vld [vmem:[%s4076_s7 + $0x40] sm:$0xf]  ;;  %v2980_v11 = vor.u32 %v3158_v7, %v2979_v6 }
 0x431   : > { %v1436_v14 = vpop.f32.mrf.mxu2  ;;  %1708 = vmatpush.bf16.msrb.mxu2 %v2864_v9 }
 0x432   : > { %v1441_v16 = vadd.f32 %v1436_v14, %v1409_v12  ;;  %v2883_v12 = vld [vmem:[%s4076_s7 + $0x30] sm:$0xf]  ;;  %v3143_v14 = vld [vmem:[%s4076_s7 + $0x44] sm:$0xf] }
 0x434   : > { %v1473_v19 = vadd.f32 %v1468_v15, %v1441_v16  ;;  %v2884_v15 = vor.u32 %v3142_v13, %v2883_v12  ;;  %v2897_v16 = vld [vmem:[%s4076_s7 + $0x48] sm:$0xf0]  ;;  %v2996_v12 = vor.u32 %v3159_v8, %v2993_v10 }
 0x436   : > { %v1505_v21 = vadd.f32 %v1500_v17, %v1473_v19  ;;  %v2900_v17 = vor.u32 %v3143_v14, %v2897_v16  ;;  %1793 = vmatpush.bf16.msra.mxu0 %v2884_v15  ;;  %v2885_v19 = vld [vmem:[%s4076_s7 + $0x38] sm:$0xf0]  ;;  %v3157_v15 = vld [vmem:[%s4076_s7 + $0xb4] sm:$0xf] }
 0x437   : > { %v2981_v16 = vld [vmem:[%s4076_s7 + $0xb8] sm:$0xf0] }
 0x438   : > { %1509 = vrot.lane.b32.xlu0 %v1505_v21, %s4090_s30 }
 0x439   : > { %v1438_v23 = vpop.f32.mrf.mxu2 }
 0x43a   : > { %v1442_v24 = vadd.f32 %v1438_v23, %v1410_v22  ;;  %v2888_v23 = vor.u32 %v3141_v18, %v2885_v19  ;;  %v3160_v18 = vld [vmem:[%s4076_s7 + $0xc4] sm:$0xf0] }
 0x43c   : > { %v1474_v26 = vadd.f32 %v1470_v25, %v1442_v24 }
 0x43e   : > { %v1506_v28 = vadd.f32 %v1502_v27, %v1474_v26  ;;  %v2907_v27 = vld [vmem:[%s4076_s7 + $0x50] sm:$0xf] }
 0x440   : > { %1511 = vrot.lane.b32.xlu1 %v1506_v28, %s4090_s30 }
 0x448   : > { %1531 = vperm.xlu1 %3239, %v1527_v29   ;;  %v3147_v29 = vld [vmem:[%s4076_s7 + $0x64] sm:$0xf] }
 0x4aa   : > { %v1510_v30 = vpop.permute.xlu0 %1509 }
 0x4ab   : > { %v1515_v31 = vmax.f32 %v1505_v21, %v1510_v30  ;;  %v3144_v21 = vld [vmem:[%s4076_s7 + $0x44] sm:$0xf0]  ;;  %v2921_v30 = vld [vmem:[%s4076_s7 + $0x68] sm:$0xf0] }
 0x4ac   : > { %v2896_v24 = vor.u32 %v3144_v21, %v2895_v20  ;;  %v2984_v20 = vor.u32 %v3157_v15, %v2981_v16 }
 0x4ad   : > { %1519 = vrot.lane.b32.xlu2 %v1515_v31, %s3326_s24 }
 0x4b2   : > { %v1512_v32 = vpop.permute.xlu1 %1511 }
 0x4b3   : > { %v1516_v34 = vmax.f32 %v1506_v28, %v1512_v32  ;;  %v3146_v28 = vld [vmem:[%s4076_s7 + $0x54] sm:$0xf0] }
 0x4b4   : > { %v2908_v32 = vor.u32 %v3146_v28, %v2907_v27 }
 0x4b5   : > { %1536 = vperm.xlu2 %3238, %v1528_v33   ;;  %1521 = vrot.lane.b32.xlu0 %v1516_v34, %s3326_s24  ;;  %v2924_v33 = vor.u32 %v3147_v29, %v2921_v30  ;;  %s377_s24 = sand.u32 1, %s3307_s18  }
 0x4b6   : > { %s378_s25 = scalar_lea.vmem [#allocation2], %s377_s24  ;;  %s2575_s29 = scalar_lea.sflag [#allocation3], %s377_s24 }
 0x4b7   : > { %s2585_s14 = sshll.u32 %s378_s25, 4  ;;  %s2586_s14 = int_to_ptr.vmem [resolvable:$true] %s2585_s14 }
 0x4ba   : > { %v1532_v49 = vpop.permute.xlu1 %1531 }
 0x507   : > { %v1520_v47 = vpop.permute.xlu2 %1519 }
 0x508   : > { %v1525_v48 = vmax.f32 %v1515_v31, %v1520_v47  ;;  %v2948_v47 = vor.u32 %v3151_v44, %v2945_v45  ;;  %v3032_v44 = vor.u32 %v3165_v42, %v3029_v43 }
 0x50a   : > { %v1539_v50 = vadd.f32 %v1532_v49, %v1525_v48 }
 0x50c   : > { %3247 = vtanh.f32 %v1539_v50  ;;  %v3149_v50 = vld [vmem:[%s4076_s7 + $0x74] sm:$0xf] }
 0x50f   : > { %v1537_v53 = vpop.permute.xlu2 %1536 }
 0x512   : > { %v3248_v55 = vpop.eup %3247 }
 0x527   : > { %v1522_v51 = vpop.permute.xlu0 %1521 }
 0x528   : > { %v1526_v52 = vmax.f32 %v1516_v34, %v1522_v51  ;;  %v2933_v51 = vld [vmem:[%s4076_s7 + $0x78] sm:$0xf0] }
 0x52a   : > { %v1540_v54 = vadd.f32 %v1537_v53, %v1526_v52  ;;  %v2943_v52 = vld [vmem:[%s4076_s7 + $0x80] sm:$0xf]  ;;  %v3152_v53 = vld [vmem:[%s4076_s7 + $0x84] sm:$0xf0] }
 0x52c   : > { %3249 = vtanh.f32 %v1540_v54  ;;  %v2936_v54 = vor.u32 %v3149_v50, %v2933_v51 }
 0x532   : > { %v3250_v56 = vpop.eup %3249 }
 0x533   : > { %v1543_v57 = vpack.c.bf16 %v3250_v56, %v3248_v55  ;;  %v2944_v55 = vor.u32 %v3152_v53, %v2943_v52  ;;  %v2955_v56 = vld [vmem:[%s4076_s7 + $0x90] sm:$0xf] }
 0x535   : > { %2844 = vmatmul.msk.bf16.vlgmr.msrb.gmra.mxu1 %vm1591_vm13, %v1543_v57  ;;  %v3154_v57 = vld [vmem:[%s4076_s7 + $0x94] sm:$0xf0] }
 0x536   : > { %1855 = vmatpush.bf16.msrb.mxu1 %v2900_v17  ;;  %v2956_v60 = vor.u32 %v3154_v57, %v2955_v56  ;;  %v2991_v17 = vld [vmem:[%s4076_s7 + $0xc0] sm:$0xf] }
 0x537   : > { %v2992_v21 = vor.u32 %v3160_v18, %v2991_v17 }
 0x5b2   : > { %v1610_v22 = vpop.f32.mrf.mxu1 }
 0x5b3   : > { %v1615_v25 = vpack.c.bf16 %v1610_v22, %v1610_v22 }
 0x5b5   : > { %v1670_v26 = vunpack.c.l.b16 %v1615_v25  ;;  %2853 = vmatmul.msk.bf16.vlgmr.msra.gmra.mxu2 %vm1630_vm14, %v1615_v25  ;;  %2854 = vmatmul.msk.bf16.vlgmr.msrb.gmra.mxu3 %vm1630_vm14, %v1615_v25  ;;  %v3163_v25 = vld [vmem:[%s4076_s7 + $0xe4] sm:$0xf] }
 0x5b6   : > { %1806 = vmatpush.bf16.msra.mxu2 %v2888_v23  ;;  %1842 = vmatpush.bf16.msrb.mxu3 %v2896_v24  ;;  %v3003_v23 = vld [vmem:[%s4076_s7 + $0xd0] sm:$0xf]  ;;  %v3162_v24 = vld [vmem:[%s4076_s7 + $0xd4] sm:$0xf0] }
 0x5b7   : > { %v1671_v31 = vpack.c.b16 %v1670_v26, %v1670_v26  ;;  %v3017_v26 = vld [vmem:[%s4076_s7 + $0xe8] sm:$0xf0]  ;;  %v3004_v27 = vor.u32 %v3162_v24, %v3003_v23 }
 0x5b8   : > { %v3020_v28 = vor.u32 %v3163_v25, %v3017_v26 }
 0x5b9   : > { %v3804_v34 = vshrl.u32 %v1671_v31, 16  ;;  %v1723_v35 = vrot.slane %v1671_v31, 1  ;;  %v1821_v49 = vrot.slane %v1671_v31, 2  ;;  %v1919_v62 = vrot.slane %v1671_v31, 3  ;;  %v3161_v31 = vld [vmem:[%s4076_s7 + $0xd4] sm:$0xf] }
 0x5ba   : > { %v1612_v9 = vpop.f32.mrf.mxu1 }
 0x5bb   : > { %2865 = vmatmul.msk.bf16.vlgmr.msrb.gmra.mxu0 %vm1630_vm14, %v3804_v34  ;;  %2878 = vmatmul.msk.bf16.vlgmr.msra.gmra.mxu1 %vm1630_vm14, %v1723_v35  ;;  %v1772_v48 = vrot.slane %v3804_v34, 1  ;;  %v1870_v63 = vrot.slane %v3804_v34, 2  ;;  %v1616_v13 = vpack.c.bf16 %v1612_v9, %v1612_v9  ;;  %v1968_v14 = vrot.slane %v3804_v34, 3 }
 0x5bc   : > { %1891 = vmatpush.bf16.msrb.mxu0 %v2908_v32  ;;  %1953 = vmatpush.bf16.msra.mxu1 %v2924_v33  ;;  %v3005_v32 = vld [vmem:[%s4076_s7 + $0xd8] sm:$0xf0]  ;;  %v3015_v33 = vld [vmem:[%s4076_s7 + $0xe0] sm:$0xf] }
 0x5bd   : > { %v2066_v19 = vunpack.c.l.b16 %v1616_v13 }
 0x5bf   : > { %v2067_v22 = vpack.c.b16 %v2066_v19, %v2066_v19 }
 0x5c1   : > { %v2069_v29 = vshrl.u32 %v2067_v22, 16  ;;  %v2119_v30 = vrot.slane %v2067_v22, 1  ;;  %v2315_v45 = vrot.slane %v2067_v22, 3 }
 0x5c5   : > { %2866 = vmatmul.msk.bf16.vlgmr.msrb.gmra.mxu2 %vm1630_vm14, %v3804_v34  ;;  %2877 = vmatmul.msk.bf16.vlgmr.msra.gmra.mxu3 %vm1630_vm14, %v1723_v35  ;;  %v3164_v34 = vld [vmem:[%s4076_s7 + $0xe4] sm:$0xf0]  ;;  %v3008_v35 = vor.u32 %v3161_v31, %v3005_v32 }
 0x5c6   : > { %1904 = vmatpush.bf16.msrb.mxu2 %v2912_v40  ;;  %1940 = vmatpush.bf16.msra.mxu3 %v2920_v41  ;;  %v3016_v36 = vor.u32 %v3164_v34, %v3015_v33  ;;  %v2217_v40 = vrot.slane %v2067_v22, 2  ;;  %v2168_v41 = vrot.slane %v2069_v29, 1 }
 0x5cb   : > { %2889 = vmatmul.msk.bf16.vlgmr.msra.gmra.mxu0 %vm1630_vm14, %v1772_v48  ;;  %2902 = vmatmul.msk.bf16.vlgmr.msrb.gmra.mxu1 %vm1630_vm14, %v1821_v49 }
 0x5cc   : > { %1989 = vmatpush.bf16.msra.mxu0 %v2932_v46  ;;  %2050 = vmatpush.bf16.msrb.mxu1 %v2948_v47  ;;  %v2266_v46 = vrot.slane %v2069_v29, 2  ;;  %v2364_v47 = vrot.slane %v2069_v29, 3 }
 0x5d5   : > { %2890 = vmatmul.msk.bf16.vlgmr.msra.gmra.mxu2 %vm1630_vm14, %v1772_v48  ;;  %2901 = vmatmul.msk.bf16.vlgmr.msrb.gmra.mxu3 %vm1630_vm14, %v1821_v49 }
 0x5d6   : > { %2002 = vmatpush.bf16.msra.mxu2 %v2936_v54  ;;  %2037 = vmatpush.bf16.msrb.mxu3 %v2944_v55 }
 0x5db   : > { %2913 = vmatmul.msk.bf16.vlgmr.msrb.gmra.mxu0 %vm1630_vm14, %v1870_v63  ;;  %2926 = vmatmul.msk.bf16.vlgmr.msra.gmra.mxu1 %vm1630_vm14, %v1919_v62 }
 0x5dc   : > { %2091 = vmatpush.bf16.msrb.mxu0 %v2956_v60  ;;  %2153 = vmatpush.bf16.msra.mxu1 %v2972_v61 }
 0x5e5   : > { %2914 = vmatmul.msk.bf16.vlgmr.msrb.gmra.mxu2 %vm1630_vm14, %v1870_v63  ;;  %2925 = vmatmul.msk.bf16.vlgmr.msra.gmra.mxu3 %vm1630_vm14, %v1919_v62 }
 0x5e6   : > { %2104 = vmatpush.bf16.msrb.mxu2 %v2960_v4  ;;  %2140 = vmatpush.bf16.msra.mxu3 %v2968_v5 }
 0x5eb   : > { %2937 = vmatmul.msk.bf16.vlgmr.msra.gmra.mxu0 %vm1630_vm14, %v1968_v14  ;;  %2950 = vmatmul.msk.bf16.vlgmr.msrb.gmra.mxu1 %vm1630_vm14, %v1616_v13 }
 0x5ec   : > { %2189 = vmatpush.bf16.msra.mxu0 %v2980_v11  ;;  %2251 = vmatpush.bf16.msrb.mxu1 %v2996_v12 }
 0x5f5   : > { %2938 = vmatmul.msk.bf16.vlgmr.msra.gmra.mxu2 %vm1630_vm14, %v1968_v14  ;;  %2949 = vmatmul.msk.bf16.vlgmr.msrb.gmra.mxu3 %vm1630_vm14, %v1616_v13 }
 0x5f6   : > { %2202 = vmatpush.bf16.msra.mxu2 %v2984_v20  ;;  %2238 = vmatpush.bf16.msrb.mxu3 %v2992_v21 }
 0x5fb   : > { %2961 = vmatmul.msk.bf16.vlgmr.msrb.gmra.mxu0 %vm1630_vm14, %v2069_v29  ;;  %2974 = vmatmul.msk.bf16.vlgmr.msra.gmra.mxu1 %vm1630_vm14, %v2119_v30 }
 0x5fc   : > { %2287 = vmatpush.bf16.msrb.mxu0 %v3004_v27  ;;  %2349 = vmatpush.bf16.msra.mxu1 %v3020_v28 }
 0x605   : > { %2962 = vmatmul.msk.bf16.vlgmr.msrb.gmra.mxu2 %vm1630_vm14, %v2069_v29  ;;  %2973 = vmatmul.msk.bf16.vlgmr.msra.gmra.mxu3 %vm1630_vm14, %v2119_v30 }
 0x606   : > { %2300 = vmatpush.bf16.msrb.mxu2 %v3008_v35  ;;  %2336 = vmatpush.bf16.msra.mxu3 %v3016_v36 }
 0x60b   : > { %2985 = vmatmul.msk.bf16.vlgmr.msra.gmra.mxu0 %vm1630_vm14, %v2168_v41  ;;  %2998 = vmatmul.msk.bf16.vlgmr.msrb.gmra.mxu1 %vm1630_vm14, %v2217_v40 }
 0x60c   : > { %2385 = vmatpush.bf16.msra.mxu0 %v3028_v39 }
 0x615   : > { %2986 = vmatmul.msk.bf16.vlgmr.msra.gmra.mxu2 %vm1630_vm14, %v2168_v41  ;;  %2997 = vmatmul.msk.bf16.vlgmr.msrb.gmra.mxu3 %vm1630_vm14, %v2217_v40 }
 0x616   : > { %2398 = vmatpush.bf16.msra.mxu2 %v3032_v44 }
 0x61b   : > { %3009 = vmatmul.msk.bf16.vlgmr.msrb.gmra.mxu0 %vm1630_vm14, %v2266_v46  ;;  %3022 = vmatmul.msk.bf16.vlgmr.msra.gmra.mxu1 %vm1630_vm14, %v2315_v45 }
 0x625   : > { %3010 = vmatmul.msk.bf16.vlgmr.msrb.gmra.mxu2 %vm1630_vm14, %v2266_v46  ;;  %3021 = vmatmul.msk.bf16.vlgmr.msra.gmra.mxu3 %vm1630_vm14, %v2315_v45 }
 0x62b   : > { %3033 = vmatmul.msk.bf16.vlgmr.msra.gmra.mxu0 %vm1630_vm14, %v2364_v47 }
 0x635   : > { %3034 = vmatmul.msk.bf16.vlgmr.msra.gmra.mxu2 %vm1630_vm14, %v2364_v47 }
 0x638   : > { %v1643_v48 = vpop.f32.mrf.mxu2  ;;  %v1656_v49 = vpop.f32.mrf.mxu3 }
 0x639   : > { %v1662_v50 = vrot.slane %v1656_v49, 7  ;;  %v1697_v51 = vpop.f32.mrf.mxu0  ;;  %v1759_v52 = vpop.f32.mrf.mxu1 }
 0x63a   : > { %v1765_v59 = vrot.slane %v1759_v52, 7 }
 0x63b   : > { %v1663_v53 = vsel %vm1177_vm10, %v1643_v48, %v1662_v50 }
 0x63c   : > { %v1665_v2 = vadd.f32 %v1663_v53, %v1617_v58  ;;  %v3173_v58 = vld [vmem:[%s4078_s9 + $0x30] sm:$0xff] }
 0x640   : > { %v1645_v54 = vpop.f32.mrf.mxu2  ;;  %v1658_v55 = vpop.f32.mrf.mxu3 }
 0x641   : > { %v1699_v56 = vpop.f32.mrf.mxu0  ;;  %v1761_v57 = vpop.f32.mrf.mxu1 }
 0x642   : > { %v3174_v56 = vld [vmem:[%s4078_s9 + $0x38] sm:$0xff] }
 0x643   : > { %v3182_v57 = vld [vmem:[%s4078_s9 + $0x78] sm:$0xff]  ;;  %2547 = vmatpush.bf16.msrb.mxu3 %v3174_v56 }
 0x644   : > { %2560 = vmatpush.bf16.msrb.mxu1 %v3182_v57 }
 0x647   : > { %2548 = vmatpush.bf16.msrb.mxu3 %v3173_v58 }
 0x648   : > { %v1710_v60 = vpop.f32.mrf.mxu2  ;;  %v1746_v61 = vpop.f32.mrf.mxu3 }
 0x649   : > { %v1716_v62 = vrot.slane %v1710_v60, 7  ;;  %v1766_v63 = vsel %vm1177_vm10, %v1746_v61, %v1765_v59  ;;  %v1795_v0 = vpop.f32.mrf.mxu0  ;;  %v1857_v1 = vpop.f32.mrf.mxu1  ;;  %v3181_v59 = vld [vmem:[%s4078_s9 + $0x70] sm:$0xff] }
 0x64a   : > { %v1863_v10 = vrot.slane %v1857_v1, 7  ;;  %2561 = vmatpush.bf16.msrb.mxu1 %v3181_v59  ;;  %v3180_v1 = vld [vmem:[%s4078_s9 + $0x68] sm:$0xff] }
 0x64b   : > { %v1717_v3 = vsel %vm1177_vm10, %v1697_v51, %v1716_v62 }
 0x64c   : > { %v1719_v4 = vadd.f32 %v1717_v3, %v1665_v2  ;;  %v3171_v2 = vld [vmem:[%s4078_s9 + $0x20] sm:$0xff] }
 0x64d   : > { %v3179_v3 = vld [vmem:[%s4078_s9 + $0x60] sm:$0xff] }
 0x64e   : > { %v1768_v5 = vadd.f32 %v1766_v63, %v1719_v4  ;;  %2562 = vmatpush.bf16.msrb.mxu1 %v3180_v1 }
 0x650   : > { %v1712_v6 = vpop.f32.mrf.mxu2  ;;  %v1748_v7 = vpop.f32.mrf.mxu3 }
 0x651   : > { %v1797_v8 = vpop.f32.mrf.mxu0  ;;  %v1859_v9 = vpop.f32.mrf.mxu1 }
 0x652   : > { %2563 = vmatpush.bf16.msrb.mxu1 %v3179_v3  ;;  %v3170_v8 = vld [vmem:[%s4078_s9 + $0x18] sm:$0xff] }
 0x653   : > { %v3178_v9 = vld [vmem:[%s4078_s9 + $0x58] sm:$0xff] }
 0x656   : > { %2564 = vmatpush.bf16.msrb.mxu1 %v3178_v9 }
 0x658   : > { %v1808_v11 = vpop.f32.mrf.mxu2  ;;  %v1844_v12 = vpop.f32.mrf.mxu3 }
 0x659   : > { %v1814_v13 = vrot.slane %v1808_v11, 7  ;;  %v1864_v14 = vsel %vm1177_vm10, %v1844_v12, %v1863_v10  ;;  %v1893_v15 = vpop.f32.mrf.mxu0  ;;  %v1955_v16 = vpop.f32.mrf.mxu1  ;;  %v3169_v10 = vld [vmem:[%s4078_s9 + $0x10] sm:$0xff] }
 0x65a   : > { %v1961_v24 = vrot.slane %v1955_v16, 7  ;;  %v3177_v11 = vld [vmem:[%s4078_s9 + $0x50] sm:$0xff] }
 0x65b   : > { %v1815_v17 = vsel %vm1177_vm10, %v1795_v0, %v1814_v13  ;;  %v3172_v0 = vld [vmem:[%s4078_s9 + $0x28] sm:$0xff]  ;;  %2565 = vmatpush.bf16.msrb.mxu1 %v3177_v11 }
 0x65c   : > { %v1817_v18 = vadd.f32 %v1815_v17, %v1768_v5  ;;  %2549 = vmatpush.bf16.msrb.mxu3 %v3172_v0 }
 0x65e   : > { %v1866_v19 = vadd.f32 %v1864_v14, %v1817_v18  ;;  %v3168_v14 = vld [vmem:[%s4078_s9 + $0x8] sm:$0xff] }
 0x660   : > { %v1810_v20 = vpop.f32.mrf.mxu2  ;;  %v1846_v21 = vpop.f32.mrf.mxu3  ;;  %2550 = vmatpush.bf16.msrb.mxu3 %v3171_v2 }
 0x661   : > { %v1895_v22 = vpop.f32.mrf.mxu0  ;;  %v1957_v23 = vpop.f32.mrf.mxu1  ;;  %v3175_v20 = vld [vmem:[%s4078_s9 + $0x40] sm:$0xff] }
 0x664   : > { %2551 = vmatpush.bf16.msrb.mxu3 %v3170_v8 }
 0x668   : > { %v1906_v25 = vpop.f32.mrf.mxu2  ;;  %v1942_v26 = vpop.f32.mrf.mxu3  ;;  %2552 = vmatpush.bf16.msrb.mxu3 %v3169_v10 }
 0x669   : > { %v1912_v27 = vrot.slane %v1906_v25, 7  ;;  %v1962_v28 = vsel %vm1177_vm10, %v1942_v26, %v1961_v24  ;;  %v1991_v29 = vpop.f32.mrf.mxu0  ;;  %v2052_v30 = vpop.f32.mrf.mxu1 }
 0x66a   : > { %v2058_v43 = vrot.slane %v2052_v30, 7 }
 0x66b   : > { %v1913_v31 = vsel %vm1177_vm10, %v1893_v15, %v1912_v27  ;;  %v3176_v15 = vld [vmem:[%s4078_s9 + $0x48] sm:$0xff] }
 0x66c   : > { %v1915_v32 = vadd.f32 %v1913_v31, %v1866_v19  ;;  %2553 = vmatpush.bf16.msrb.mxu3 %v3168_v14  ;;  %2566 = vmatpush.bf16.msrb.mxu1 %v3176_v15  ;;  %v3167_v19 = vld [vmem:[%s4078_s9] sm:$0xff] }
 0x66e   : > { %v1964_v33 = vadd.f32 %v1962_v28, %v1915_v32 }
 0x670   : > { %v1908_v34 = vpop.f32.mrf.mxu2  ;;  %v1944_v35 = vpop.f32.mrf.mxu3  ;;  %2554 = vmatpush.bf16.msrb.mxu3 %v3167_v19  ;;  %2567 = vmatpush.bf16.msrb.mxu1 %v3175_v20 }
 0x671   : > { %v1993_v36 = vpop.f32.mrf.mxu0  ;;  %v2054_v37 = vpop.f32.mrf.mxu1 }
 0x678   : > { %v2004_v38 = vpop.f32.mrf.mxu2  ;;  %v2039_v39 = vpop.f32.mrf.mxu3 }
 0x679   : > { %v2010_v40 = vrot.slane %v2004_v38, 7  ;;  %v2093_v41 = vpop.f32.mrf.mxu0  ;;  %v3971_v42 = vpop.f32.mrf.mxu1  ;;  %v2059_v46 = vsel %vm1177_vm10, %v2039_v39, %v2058_v43 }
 0x67a   : > { %v2161_v27 = vrot.slane %v3971_v42, 7 }
 0x67b   : > { %v2011_v44 = vsel %vm1177_vm10, %v1991_v29, %v2010_v40 }
 0x67c   : > { %v2013_v45 = vadd.f32 %v2011_v44, %v1964_v33 }
 0x67e   : > { %v2061_v47 = vadd.f32 %v2059_v46, %v2013_v45 }
 0x680   : > { %v2006_v48 = vpop.f32.mrf.mxu2  ;;  %v2041_v49 = vpop.f32.mrf.mxu3 }
 0x681   : > { %v2095_v50 = vpop.f32.mrf.mxu0  ;;  %v2157_v51 = vpop.f32.mrf.mxu1 }
 0x688   : > { %v2106_v52 = vpop.f32.mrf.mxu2  ;;  %v2142_v53 = vpop.f32.mrf.mxu3 }
 0x689   : > { %v2191_v54 = vpop.f32.mrf.mxu0  ;;  %v3975_v55 = vpop.f32.mrf.mxu1  ;;  %v2112_v18 = vrot.slane %v2106_v52, 7  ;;  %v2162_v28 = vsel %vm1177_vm10, %v2142_v53, %v2161_v27 }
 0x68a   : > { %v2259_v35 = vrot.slane %v3975_v55, 7  ;;  %v2450_v55 = vld [vmem:[%s4079_s10] sm:$0x1] }
 0x68b   : > { %v2113_v21 = vsel %vm1177_vm10, %v2093_v41, %v2112_v18 }
 0x68c   : > { %v2115_v26 = vadd.f32 %v2113_v21, %v2061_v47 }
 0x68e   : > { %v2164_v30 = vadd.f32 %v2162_v28, %v2115_v26 }
 0x690   : > { %v2108_v60 = vpop.f32.mrf.mxu2  ;;  %v2144_v61 = vpop.f32.mrf.mxu3 }
 0x691   : > { %v2193_v62 = vpop.f32.mrf.mxu0  ;;  %v2255_v63 = vpop.f32.mrf.mxu1 }
 0x698   : > { %v2204_v4 = vpop.f32.mrf.mxu2  ;;  %v2240_v5 = vpop.f32.mrf.mxu3 }
 0x699   : > { %v2289_v6 = vpop.f32.mrf.mxu0  ;;  %v2351_v7 = vpop.f32.mrf.mxu1  ;;  %v2210_v24 = vrot.slane %v2204_v4, 7  ;;  %v2260_v37 = vsel %vm1177_vm10, %v2240_v5, %v2259_v35 }
 0x69a   : > { %v2357_v41 = vrot.slane %v2351_v7, 7 }
 0x69b   : > { %v2211_v29 = vsel %vm1177_vm10, %v2191_v54, %v2210_v24 }
 0x69c   : > { %v2213_v32 = vadd.f32 %v2211_v29, %v2164_v30 }
 0x69e   : > { %v2262_v39 = vadd.f32 %v2260_v37, %v2213_v32 }
 0x6a0   : > { %v2206_v12 = vpop.f32.mrf.mxu2  ;;  %v2242_v13 = vpop.f32.mrf.mxu3 }
 0x6a1   : > { %v2291_v16 = vpop.f32.mrf.mxu0  ;;  %v2353_v17 = vpop.f32.mrf.mxu1 }
 0x6a8   : > { %v2302_v22 = vpop.f32.mrf.mxu2  ;;  %v2338_v23 = vpop.f32.mrf.mxu3 }
 0x6a9   : > { %v2387_v25 = vpop.f32.mrf.mxu0  ;;  %v2308_v31 = vrot.slane %v2302_v22, 7  ;;  %v2358_v43 = vsel %vm1177_vm10, %v2338_v23, %v2357_v41 }
 0x6ab   : > { %v2309_v38 = vsel %vm1177_vm10, %v2289_v6, %v2308_v31 }
 0x6ac   : > { %v2311_v40 = vadd.f32 %v2309_v38, %v2262_v39 }
 0x6ae   : > { %v2360_v45 = vadd.f32 %v2358_v43, %v2311_v40 }
 0x6b0   : > { %v2304_v33 = vpop.f32.mrf.mxu2  ;;  %v2340_v34 = vpop.f32.mrf.mxu3 }
 0x6b1   : > { %v2389_v36 = vpop.f32.mrf.mxu0 }
 0x6b8   : > { %v2400_v42 = vpop.f32.mrf.mxu2 }
 0x6b9   : > { %v2406_v44 = vrot.slane %v2400_v42, 7 }
 0x6bb   : > { %v2407_v46 = vsel %vm1177_vm10, %v2387_v25, %v2406_v44 }
 0x6bc   : > { %v2409_v47 = vadd.f32 %v2407_v46, %v2360_v45 }
 0x6be   : > { %3251 = vtanh.f32 %v2409_v47 }
 0x6c0   : > { %v2402_v48 = vpop.f32.mrf.mxu2 }
 0x6c4   : > { %v3252_v49 = vpop.eup %3251 }
 0x6c5   : > { %v2412_v50 = vperm.slane %v3252_v49, 0  ;;  %v2413_v51 = vperm.slane %v3252_v49, 1 }
 0x6c7   : > { %v2416_v52 = vpack.c.bf16 %v2412_v50, %v2412_v50  ;;  %v2417_v53 = vpack.c.bf16 %v2413_v51, %v2413_v51 }
 0x6c9   : > { %2555 = vmatmul.bf16.vlgmr.msrb.gmra.mxu3 %v2416_v52  ;;  %2568 = vmatmul.bf16.vlgmr.msrb.gmra.mxu1 %v2417_v53 }
 0x746   : > { %v2569_v54 = vpop.f32.mrf.mxu1 }
 0x74c   : > { %v2556_v56 = vpop.f32.mrf.mxu3 }
 0x74d   : > { %v2557_v57 = vadd.f32 %v2556_v56, %v2450_v55 }
 0x74e   : > { %v2571_v58 = vpop.f32.mrf.mxu1 }
 0x74f   : > { %v2570_v59 = vadd.f32 %v2569_v54, %v2557_v57 }
 0x751   : > { %2573 = vst [vmem:[%s378_s25] sm:$0x1] %v2570_v59 }
 0x752   : > { %3280 = shalt.err (!%p3277_p3)
}
 0x753   : > { %3184 = dma.vmem_to_hbm [thread:$0]  (%p3430_p5), %s2586_s14, 16, %s2588_s22, %s2575_s29  }
 0x754   : > { %v2558_v60 = vpop.f32.mrf.mxu3 }
 0x755 PF: > { %p3190_p4 = scmp.ge.s32.totalorder %s3315_s20, 2  ;;  %s2599_s24 = sand.u32 1, %s3303_s17  }
 0x756   : > { %s2600_s25 = scalar_lea.sflag [#allocation3], %s2599_s24 }
 0x757   : > { %p3187_p7 = pnand %p3190_p4, %p3434_p6 }
 0x759   : > { %p3188_p8 = pneg %p3187_p7 }
 0x75b   : > { %3298 = dma.done.wait (%p3188_p8), %s2600_s25, 16  }
 0x75c   : > { %3300 = vsyncadd (%p3188_p8), %s2600_s25, 4294967280  ;;  %p21_p9 = scmp.ge.s32.totalorder %s3417_s23, 4   ;;  %s4092_s17 = smov %s3307_s18 }
 0x75d   : > { %s4093_s18 = smov %s3311_s19  ;;  %s4094_s19 = smov %s3428_s26 }
 0x75e   : > { %s4095_s20 = smov %s3417_s23  ;;  %23 = sbr.rel (!%p21_p9) target bundleno = 5 (0x5), region = 130 }
 0x763   :  { %2605 = vsyncpa [#allocation3], 1 }
 0x764   :  { %2607 = vsyncpa [#allocation3 + $0x1], 1 }

</bundles_post_ra>
